<compile_context>
chip_gen: v5e
topology: v5e:2x2
jax: 0.10.0
libtpu: 0.0.40
codegen_flags: <defaults>
</compile_context>

<pallas_src>
import math
import functools

import jax
import jax.numpy as jnp
import numpy as np
from jax import lax
from jax.experimental import pallas as pl
from jax.experimental.pallas import tpu as pltpu


# ------------------------------------------------------------------ kernel ---
def decoder_stack_kernel(
    x_ref, enc_ref, tbias_ref, sbias_ref,
    wqkv1_ref, bqkv1_ref, wo1_ref, bo1_ref,
    wq2_ref, bq2_ref, wkv2_ref, bkv2_ref, wo2_ref, bo2_ref,
    ln1w_ref, ln1b_ref, ln2w_ref, ln2b_ref, ln3w_ref, ln3b_ref,
    w1_ref, b1_ref, w2_ref, b2_ref,
    o_ref,
    head_scratch,
    *, num_heads, B, St, Ss):
    """One grid step == one decoder layer applied to the whole batch."""
    layer = pl.program_id(0)
    D = o_ref.shape[-1]
    dk = D // num_heads
    scale = 1.0 / math.sqrt(dk)
    eps = 1e-5

    # Layer 0: seed the resident output block with the embedded input.
    @pl.when(layer == 0)
    def _():
        o_ref[...] = x_ref[...]

    x2d = o_ref[...]                     # (B*St, D) activation carried in VMEM
    enc2d = enc_ref[...]                 # (B*Ss, D) encoder output
    tbias = tbias_ref[...]               # (B, St, St) additive target mask bias
    sbias = sbias_ref[...]               # (B, St, Ss) additive source mask bias

    def attend(q2d, k2d, v2d, s_kv, bias, wo, bo):
        """q2d: (B*St, D) already scaled; k2d/v2d: (B*s_kv, D)."""
        q3 = q2d.reshape(B, St, D)
        k3 = k2d.reshape(B, s_kv, D)
        v3 = v2d.reshape(B, s_kv, D)
        # Heads: static unroll, each head batched over B via dot_general
        # (contract last dims -> no explicit transpose); write directly into
        # the VMEM scratch slab instead of concatenating.
        for h in range(num_heads):
            sl = slice(h * dk, (h + 1) * dk)
            s = jnp.einsum('bqd,bkd->bqk', q3[:, :, sl], k3[:, :, sl],
                           preferred_element_type=jnp.float32)
            s = s + bias                               # additive mask
            m = jnp.max(s, axis=-1, keepdims=True)
            e = jnp.exp(s - m)
            p = e * pl.reciprocal(jnp.sum(e, axis=-1, keepdims=True), approx=True)
            head_scratch[:, :, sl] = jnp.einsum(
                'bqk,bkd->bqd', p, v3[:, :, sl],
                preferred_element_type=jnp.float32)
        concat = head_scratch[...].reshape(B * St, D)
        return jnp.dot(concat, wo[0], preferred_element_type=jnp.float32) + bo[0]

    def layer_norm(h, w, b):
        # Single-pass mean / mean-of-squares (independent reductions) + rsqrt.
        mu = jnp.mean(h, axis=-1, keepdims=True)
        ms = jnp.mean(h * h, axis=-1, keepdims=True)
        var = ms - mu * mu
        return (h - mu) * lax.rsqrt(var + eps) * w[0] + b[0]

    # ---- masked self-attention + residual + LN1 -----------------------------
    qkv = jnp.dot(x2d, wqkv1_ref[0],
                  preferred_element_type=jnp.float32) + bqkv1_ref[0]
    q = qkv[:, :D] * scale
    k = qkv[:, D:2 * D]
    v = qkv[:, 2 * D:]
    sa = attend(q, k, v, St, tbias, wo1_ref, bo1_ref)
    h1 = layer_norm(x2d + sa, ln1w_ref, ln1b_ref)

    # ---- encoder-decoder cross-attention + residual + LN2 -------------------
    qc = (jnp.dot(h1, wq2_ref[0],
                  preferred_element_type=jnp.float32) + bq2_ref[0]) * scale
    kvc = jnp.dot(enc2d, wkv2_ref[0],
                  preferred_element_type=jnp.float32) + bkv2_ref[0]
    kc = kvc[:, :D]
    vc = kvc[:, D:]
    ca = attend(qc, kc, vc, Ss, sbias, wo2_ref, bo2_ref)
    h2 = layer_norm(h1 + ca, ln2w_ref, ln2b_ref)

    # ---- position-wise feed-forward + residual + LN3 ------------------------
    f = jnp.dot(h2, w1_ref[0], preferred_element_type=jnp.float32) + b1_ref[0]
    f = jnp.maximum(f, 0.0)
    ff = jnp.dot(f, w2_ref[0], preferred_element_type=jnp.float32) + b2_ref[0]
    h3 = layer_norm(h2 + ff, ln3w_ref, ln3b_ref)

    o_ref[...] = h3.astype(o_ref.dtype)


# ----------------------------------------------------------------- wrapper ---
def decoder_forward(tgt_ids, enc_output, src_mask, tgt_mask, params, pe,
                    d_model, num_heads):
    """tgt_ids: (B, St) int32, enc_output: (B, Ss, D),
       src_mask: (B,1,1,Ss), tgt_mask: (B,1,St,St)."""
    B, St = tgt_ids.shape
    Ss = enc_output.shape[1]
    D = d_model
    L = len(params["layers"])
    F = params["layers"][0]["w1"].shape[1]

    # Embedding + positional encoding (dropout == identity at inference).
    x = params["emb"][tgt_ids] * math.sqrt(d_model)
    x = x + pe[:, :St]

    # Pack batch into the row (sublane) dimension: (B*S, D).
    x2d = x.reshape(B * St, D).astype(jnp.float32)
    enc2d = enc_output.reshape(B * Ss, D).astype(jnp.float32)

    # Precompute additive mask biases (0 where visible, -1e9 where masked).
    def prep_bias(m, sq, sk):
        m = m.reshape(B, *m.shape[-2:])
        m = jnp.broadcast_to(m, (B, sq, sk))
        return jnp.where(m == 0, -1000000000.0, 0.0).astype(jnp.float32)

    tbias = prep_bias(tgt_mask, St, St)
    sbias = prep_bias(src_mask, St, Ss)

    # Stack per-layer weights along a leading layer axis -> streamed per step.
    lys = params["layers"]
    stk = lambda name: jnp.stack([lp[name] for lp in lys])
    cat = lambda names, ax: jnp.stack(
        [jnp.concatenate([lp[n] for n in names], axis=ax) for lp in lys])

    wqkv1 = cat(["wq1", "wk1", "wv1"], 1)   # (L, D, 3D)
    bqkv1 = cat(["bq1", "bk1", "bv1"], 1)   # (L, 1, 3D)
    wkv2 = cat(["wk2", "wv2"], 1)           # (L, D, 2D)
    bkv2 = cat(["bk2", "bv2"], 1)           # (L, 1, 2D)

    def cspec(*shp):                       # constant (layer-invariant) input
        return pl.BlockSpec(shp, lambda l: (0,) * len(shp))

    def wspec(*shp):                       # per-layer weight (streamed)
        return pl.BlockSpec((1,) + shp, lambda l: (l,) + (0,) * len(shp))

    kernel = functools.partial(decoder_stack_kernel,
                               num_heads=num_heads, B=B, St=St, Ss=Ss)

    out2d = pl.pallas_call(
        kernel,
        out_shape=jax.ShapeDtypeStruct((B * St, D), jnp.float32),
        grid_spec=pltpu.PrefetchScalarGridSpec(
            num_scalar_prefetch=0,
            grid=(L,),
            in_specs=[
                cspec(B * St, D),               # embedded target
                cspec(B * Ss, D),               # encoder output
                cspec(B, St, St),               # target mask bias
                cspec(B, St, Ss),               # source mask bias
                wspec(D, 3 * D), wspec(1, 3 * D),   # self-attn fused wqkv, bqkv
                wspec(D, D), wspec(1, D),           #            wo, bo
                wspec(D, D), wspec(1, D),           # cross-attn wq, bq
                wspec(D, 2 * D), wspec(1, 2 * D),   #            fused wkv, bkv
                wspec(D, D), wspec(1, D),           #            wo, bo
                wspec(1, D), wspec(1, D),           # ln1 w, b
                wspec(1, D), wspec(1, D),           # ln2 w, b
                wspec(1, D), wspec(1, D),           # ln3 w, b
                wspec(D, F), wspec(1, F),           # fc1 w, b
                wspec(F, D), wspec(1, D),           # fc2 w, b
            ],
            out_specs=pl.BlockSpec((B * St, D), lambda l: (0, 0)),
            scratch_shapes=[pltpu.VMEM((B, St, D), jnp.float32)],
        ),
        compiler_params=pltpu.CompilerParams(
            dimension_semantics=("arbitrary",)),
    )(x2d, enc2d, tbias, sbias,
      wqkv1, bqkv1, stk("wo1"), stk("bo1"),
      stk("wq2"), stk("bq2"), wkv2, bkv2, stk("wo2"), stk("bo2"),
      stk("ln1w"), stk("ln1b"), stk("ln2w"), stk("ln2b"),
      stk("ln3w"), stk("ln3b"),
      stk("w1"), stk("b1"), stk("w2"), stk("b2"))

    return out2d.reshape(B, St, D)


# -------------------------------------------------------------------- misc ---
def make_positional_encoding(max_len, d_model):
    position = jnp.arange(max_len, dtype=jnp.float32)[:, None]
    div_term = jnp.exp(jnp.arange(0, d_model, 2, dtype=jnp.float32)
                       * (-math.log(10000.0) / d_model))
    pe = jnp.zeros((max_len, d_model), dtype=jnp.float32)
    pe = pe.at[:, 0::2].set(jnp.sin(position * div_term))
    pe = pe.at[:, 1::2].set(jnp.cos(position * div_term))
    return pe[None]                                     # (1, max_len, D)


def init_params(key, vocab_size, d_model, num_layers, num_heads, d_ff):
    keys = jax.random.split(key, 1 + num_layers)
    emb = jax.random.normal(keys[0], (vocab_size, d_model), jnp.float32) * 0.02

    def layer_params(k):
        ks = jax.random.split(k, 26)
        s = 0.02
        W = lambda i, din, dout: jax.random.normal(ks[i], (din, dout), jnp.float32) * s
        Bv = lambda i, dout: jax.random.normal(ks[i], (1, dout), jnp.float32) * s
        return dict(
            wq1=W(0, d_model, d_model), bq1=Bv(1, d_model),
            wk1=W(2, d_model, d_model), bk1=Bv(3, d_model),
            wv1=W(4, d_model, d_model), bv1=Bv(5, d_model),
            wo1=W(6, d_model, d_model), bo1=Bv(7, d_model),
            wq2=W(8, d_model, d_model), bq2=Bv(9, d_model),
            wk2=W(10, d_model, d_model), bk2=Bv(11, d_model),
            wv2=W(12, d_model, d_model), bv2=Bv(13, d_model),
            wo2=W(14, d_model, d_model), bo2=Bv(15, d_model),
            w1=W(16, d_model, d_ff), b1=Bv(17, d_ff),
            w2=W(18, d_ff, d_model), b2=Bv(19, d_model),
            ln1w=1.0 + Bv(20, d_model), ln1b=Bv(21, d_model),
            ln2w=1.0 + Bv(22, d_model), ln2b=Bv(23, d_model),
            ln3w=1.0 + Bv(24, d_model), ln3b=Bv(25, d_model),
        )

    layers = [layer_params(keys[1 + i]) for i in range(num_layers)]
    return dict(emb=emb, layers=layers)


# ----------------------------------------------------------- JAX reference ---
def decoder_forward_ref(tgt_ids, enc_output, src_mask, tgt_mask, params, pe,
                        d_model, num_heads):
    B, St = tgt_ids.shape
    dk = d_model // num_heads
    x = params["emb"][tgt_ids] * math.sqrt(d_model)
    x = x + pe[:, :St]

    def mha(q_in, kv_in, mask, wq, bq, wk, bk, wv, bv, wo, bo):
        Sq, Sk = q_in.shape[1], kv_in.shape[1]
        q = (q_in @ wq + bq).reshape(B, Sq, num_heads, dk).transpose(0, 2, 1, 3)
        k = (kv_in @ wk + bk).reshape(B, Sk, num_heads, dk).transpose(0, 2, 1, 3)
        v = (kv_in @ wv + bv).reshape(B, Sk, num_heads, dk).transpose(0, 2, 1, 3)
        scores = jnp.einsum("bhqd,bhkd->bhqk", q, k) / math.sqrt(dk)
        scores = jnp.where(mask == 0, -1000000000.0, scores)
        attn = jax.nn.softmax(scores, axis=-1)
        o = jnp.einsum("bhqk,bhkd->bhqd", attn, v)
        o = o.transpose(0, 2, 1, 3).reshape(B, Sq, d_model)
        return o @ wo + bo

    def ln(h, w, b):
        mu = h.mean(-1, keepdims=True)
        var = ((h - mu) ** 2).mean(-1, keepdims=True)
        return (h - mu) / jnp.sqrt(var + 1e-5) * w + b

    tmask = tgt_mask.astype(jnp.float32)
    smask = src_mask.astype(jnp.float32)
    for p in params["layers"]:
        sa = mha(x, x, tmask, p["wq1"], p["bq1"], p["wk1"], p["bk1"],
                 p["wv1"], p["bv1"], p["wo1"], p["bo1"])
        x = ln(x + sa, p["ln1w"], p["ln1b"])
        ca = mha(x, enc_output, smask, p["wq2"], p["bq2"], p["wk2"], p["bk2"],
                 p["wv2"], p["bv2"], p["wo2"], p["bo2"])
        x = ln(x + ca, p["ln2w"], p["ln2b"])
        ff = jnp.maximum(x @ p["w1"] + p["b1"], 0.0) @ p["w2"] + p["b2"]
        x = ln(x + ff, p["ln3w"], p["ln3b"])
    return x


# -------------------------------------------------------------------- main ---
if __name__ == "__main__":
    vocab_size, d_model, num_layers, num_heads, d_ff = 50, 32, 2, 4, 64
    B, St, Ss = 2, 8, 8

    key = jax.random.PRNGKey(0)
    k_param, k_ids, k_enc = jax.random.split(key, 3)

    params = init_params(k_param, vocab_size, d_model, num_layers, num_heads, d_ff)
    pe = make_positional_encoding(128, d_model)

    tgt_ids = jax.random.randint(k_ids, (B, St), 0, vocab_size, dtype=jnp.int32)
    enc_output = jax.random.normal(k_enc, (B, Ss, d_model), jnp.float32)

    # source padding mask: last two encoder positions of batch 1 are padding
    src_mask = jnp.ones((B, 1, 1, Ss), dtype=jnp.int32)
    src_mask = src_mask.at[1, :, :, -2:].set(0)
    # target mask: causal combined with padding (last target pos of batch 1)
    causal = jnp.tril(jnp.ones((St, St), dtype=jnp.int32))
    tgt_pad = jnp.ones((B, St), dtype=jnp.int32).at[1, -1].set(0)
    tgt_mask = causal[None, None] * tgt_pad[:, None, None, :]

    out = decoder_forward(tgt_ids, enc_output, src_mask, tgt_mask,
                          params, pe, d_model, num_heads)
    out = jax.block_until_ready(out)

    ref = decoder_forward_ref(tgt_ids, enc_output, src_mask, tgt_mask,
                              params, pe, d_model, num_heads)
    np.testing.assert_allclose(np.asarray(out), np.asarray(ref),
                               rtol=2e-3, atol=2e-3)

    print("KERNEL_OK")
</pallas_src>

<mosaic_0001>
module attributes {stable_mosaic.version = 11 : i64} {
  func.func @decoder_stack_kernel(%arg0: i32, %arg1: memref<16x32xf32, #tpu.memory_space<vmem>>, %arg2: memref<16x32xf32, #tpu.memory_space<vmem>>, %arg3: memref<2x8x8xf32, #tpu.memory_space<vmem>>, %arg4: memref<2x8x8xf32, #tpu.memory_space<vmem>>, %arg5: memref<1x32x96xf32, #tpu.memory_space<vmem>>, %arg6: memref<1x1x96xf32, #tpu.memory_space<vmem>>, %arg7: memref<1x32x32xf32, #tpu.memory_space<vmem>>, %arg8: memref<1x1x32xf32, #tpu.memory_space<vmem>>, %arg9: memref<1x32x32xf32, #tpu.memory_space<vmem>>, %arg10: memref<1x1x32xf32, #tpu.memory_space<vmem>>, %arg11: memref<1x32x64xf32, #tpu.memory_space<vmem>>, %arg12: memref<1x1x64xf32, #tpu.memory_space<vmem>>, %arg13: memref<1x32x32xf32, #tpu.memory_space<vmem>>, %arg14: memref<1x1x32xf32, #tpu.memory_space<vmem>>, %arg15: memref<1x1x32xf32, #tpu.memory_space<vmem>>, %arg16: memref<1x1x32xf32, #tpu.memory_space<vmem>>, %arg17: memref<1x1x32xf32, #tpu.memory_space<vmem>>, %arg18: memref<1x1x32xf32, #tpu.memory_space<vmem>>, %arg19: memref<1x1x32xf32, #tpu.memory_space<vmem>>, %arg20: memref<1x1x32xf32, #tpu.memory_space<vmem>>, %arg21: memref<1x32x64xf32, #tpu.memory_space<vmem>>, %arg22: memref<1x1x64xf32, #tpu.memory_space<vmem>>, %arg23: memref<1x64x32xf32, #tpu.memory_space<vmem>>, %arg24: memref<1x1x32xf32, #tpu.memory_space<vmem>>, %arg25: memref<16x32xf32, #tpu.memory_space<vmem>>, %arg26: memref<2x8x32xf32, #tpu.memory_space<vmem>>) attributes {dimension_semantics = [#tpu.dimension_semantics<arbitrary>], iteration_bounds = array<i64: 2>, scalar_prefetch = 0 : i64, scratch_operands = 1 : i64, tpu.core_type = #tpu.core_type<tc>, window_params = [{pipeline_mode = #tpu.pipeline_mode<synchronous>, transform_indices = @transform_0, window_bounds = array<i64: 16, 32>}, {pipeline_mode = #tpu.pipeline_mode<synchronous>, transform_indices = @transform_1, window_bounds = array<i64: 16, 32>}, {pipeline_mode = #tpu.pipeline_mode<synchronous>, transform_indices = @transform_2, window_bounds = array<i64: 2, 8, 8>}, {pipeline_mode = #tpu.pipeline_mode<synchronous>, transform_indices = @transform_3, window_bounds = array<i64: 2, 8, 8>}, {transform_indices = @transform_4, window_bounds = array<i64: 1, 32, 96>}, {transform_indices = @transform_5, window_bounds = array<i64: 1, 1, 96>}, {transform_indices = @transform_6, window_bounds = array<i64: 1, 32, 32>}, {transform_indices = @transform_7, window_bounds = array<i64: 1, 1, 32>}, {transform_indices = @transform_8, window_bounds = array<i64: 1, 32, 32>}, {transform_indices = @transform_9, window_bounds = array<i64: 1, 1, 32>}, {transform_indices = @transform_10, window_bounds = array<i64: 1, 32, 64>}, {transform_indices = @transform_11, window_bounds = array<i64: 1, 1, 64>}, {transform_indices = @transform_12, window_bounds = array<i64: 1, 32, 32>}, {transform_indices = @transform_13, window_bounds = array<i64: 1, 1, 32>}, {transform_indices = @transform_14, window_bounds = array<i64: 1, 1, 32>}, {transform_indices = @transform_15, window_bounds = array<i64: 1, 1, 32>}, {transform_indices = @transform_16, window_bounds = array<i64: 1, 1, 32>}, {transform_indices = @transform_17, window_bounds = array<i64: 1, 1, 32>}, {transform_indices = @transform_18, window_bounds = array<i64: 1, 1, 32>}, {transform_indices = @transform_19, window_bounds = array<i64: 1, 1, 32>}, {transform_indices = @transform_20, window_bounds = array<i64: 1, 32, 64>}, {transform_indices = @transform_21, window_bounds = array<i64: 1, 1, 64>}, {transform_indices = @transform_22, window_bounds = array<i64: 1, 64, 32>}, {transform_indices = @transform_23, window_bounds = array<i64: 1, 1, 32>}, {pipeline_mode = #tpu.pipeline_mode<synchronous>, transform_indices = @transform_24, window_bounds = array<i64: 16, 32>}]} {
    %c0_i32 = arith.constant 0 : i32
    %0 = arith.cmpi eq, %arg0, %c0_i32 : i32
    %1 = arith.extui %0 : i1 to i32
    %c0_i32_0 = arith.constant 0 : i32
    %2 = arith.cmpi ne, %1, %c0_i32_0 : i32
    scf.if %2 {
      %c0_155 = arith.constant 0 : index
      %c0_156 = arith.constant 0 : index
      %295 = vector.load %arg1[%c0_155, %c0_156] : memref<16x32xf32, #tpu.memory_space<vmem>>, vector<16x32xf32>
      %c0_157 = arith.constant 0 : index
      %c0_158 = arith.constant 0 : index
      %296 = vector.load %arg25[%c0_157, %c0_158] : memref<16x32xf32, #tpu.memory_space<vmem>>, vector<16x32xf32>
      tpu.vector_store %arg25[%c0_157, %c0_158], %295 {strides = array<i32>} : memref<16x32xf32, #tpu.memory_space<vmem>>, vector<16x32xf32>,
    } else {
    }
    %c0 = arith.constant 0 : index
    %c0_1 = arith.constant 0 : index
    %3 = vector.load %arg25[%c0, %c0_1] : memref<16x32xf32, #tpu.memory_space<vmem>>, vector<16x32xf32>
    %c0_2 = arith.constant 0 : index
    %c0_3 = arith.constant 0 : index
    %4 = vector.load %arg2[%c0_2, %c0_3] : memref<16x32xf32, #tpu.memory_space<vmem>>, vector<16x32xf32>
    %c0_4 = arith.constant 0 : index
    %c0_5 = arith.constant 0 : index
    %c0_6 = arith.constant 0 : index
    %5 = vector.load %arg3[%c0_4, %c0_5, %c0_6] : memref<2x8x8xf32, #tpu.memory_space<vmem>>, vector<2x8x8xf32>
    %c0_7 = arith.constant 0 : index
    %c0_8 = arith.constant 0 : index
    %c0_9 = arith.constant 0 : index
    %6 = vector.load %arg4[%c0_7, %c0_8, %c0_9] : memref<2x8x8xf32, #tpu.memory_space<vmem>>, vector<2x8x8xf32>
    %c0_10 = arith.constant 0 : index
    %c0_11 = arith.constant 0 : index
    %c0_12 = arith.constant 0 : index
    %7 = vector.load %arg5[%c0_10, %c0_11, %c0_12] : memref<1x32x96xf32, #tpu.memory_space<vmem>>, vector<1x32x96xf32>
    %8 = vector.shape_cast %7 : vector<1x32x96xf32> to vector<32x96xf32>
    %cst = arith.constant dense<0.000000e+00> : vector<16x96xf32>
    %9 = tpu.matmul %3, %8, %cst {dimension_numbers = #tpu.dot_dimension_numbers<[1], [0], [0], [1], [0, 0, 1, 1], [], []>} : vector<16x32xf32>, vector<32x96xf32>, vector<16x96xf32> -> vector<16x96xf32>
    %c0_13 = arith.constant 0 : index
    %c0_14 = arith.constant 0 : index
    %c0_15 = arith.constant 0 : index
    %10 = vector.load %arg6[%c0_13, %c0_14, %c0_15] : memref<1x1x96xf32, #tpu.memory_space<vmem>>, vector<1x1x96xf32>
    %11 = vector.shape_cast %10 : vector<1x1x96xf32> to vector<1x96xf32>
    %12 = vector.broadcast %11 : vector<1x96xf32> to vector<16x96xf32>
    %13 = arith.addf %9, %12 : vector<16x96xf32>
    %14 = vector.extract_strided_slice %13 {offsets = [0, 0], sizes = [16, 32], strides = [1, 1]} : vector<16x96xf32> to vector<16x32xf32>
    %cst_16 = arith.constant 0.353553385 : f32
    %15 = vector.broadcast %cst_16 : f32 to vector<16x32xf32>
    %16 = arith.mulf %14, %15 : vector<16x32xf32>
    %17 = vector.extract_strided_slice %13 {offsets = [0, 32], sizes = [16, 32], strides = [1, 1]} : vector<16x96xf32> to vector<16x32xf32>
    %18 = vector.extract_strided_slice %13 {offsets = [0, 64], sizes = [16, 32], strides = [1, 1]} : vector<16x96xf32> to vector<16x32xf32>
    %19 = vector.shape_cast %16 : vector<16x32xf32> to vector<2x8x32xf32>
    %20 = vector.shape_cast %17 : vector<16x32xf32> to vector<2x8x32xf32>
    %21 = vector.shape_cast %18 : vector<16x32xf32> to vector<2x8x32xf32>
    %22 = vector.extract_strided_slice %19 {offsets = [0, 0, 0], sizes = [2, 8, 8], strides = [1, 1, 1]} : vector<2x8x32xf32> to vector<2x8x8xf32>
    %23 = vector.extract_strided_slice %20 {offsets = [0, 0, 0], sizes = [2, 8, 8], strides = [1, 1, 1]} : vector<2x8x32xf32> to vector<2x8x8xf32>
    "tpu.trace_start"() <{level = 10 : i32, message = "bqd,bkd->bqk"}> : () -> ()
    %cst_17 = arith.constant dense<0.000000e+00> : vector<2x8x8xf32>
    %24 = tpu.matmul %22, %23, %cst_17 {dimension_numbers = #tpu.dot_dimension_numbers<[2], [2], [1], [1], [0, 0, 0, 1, 1, 1], [0], [0]>} : vector<2x8x8xf32>, vector<2x8x8xf32>, vector<2x8x8xf32> -> vector<2x8x8xf32>
    "tpu.trace_stop"() : () -> ()
    %25 = arith.addf %24, %5 : vector<2x8x8xf32>
    %cst_18 = arith.constant dense<0xFF800000> : vector<2x8xf32>
    %26 = vector.multi_reduction <maximumf>, %25, %cst_18 [2] : vector<2x8x8xf32> to vector<2x8xf32>
    %27 = vector.shape_cast %26 : vector<2x8xf32> to vector<2x8x1xf32>
    %28 = vector.broadcast %27 : vector<2x8x1xf32> to vector<2x8x8xf32>
    %29 = arith.subf %25, %28 : vector<2x8x8xf32>
    %30 = math.exp %29 : vector<2x8x8xf32>
    %cst_19 = arith.constant dense<0.000000e+00> : vector<2x8xf32>
    %31 = vector.multi_reduction <add>, %30, %cst_19 [2] : vector<2x8x8xf32> to vector<2x8xf32>
    %32 = vector.shape_cast %31 : vector<2x8xf32> to vector<2x8x1xf32>
    %33 = tpu.reciprocal %32 {approx = true} : vector<2x8x1xf32> -> vector<2x8x1xf32>
    %34 = vector.broadcast %33 : vector<2x8x1xf32> to vector<2x8x8xf32>
    %35 = arith.mulf %30, %34 : vector<2x8x8xf32>
    %36 = vector.extract_strided_slice %21 {offsets = [0, 0, 0], sizes = [2, 8, 8], strides = [1, 1, 1]} : vector<2x8x32xf32> to vector<2x8x8xf32>
    "tpu.trace_start"() <{level = 10 : i32, message = "bqk,bkd->bqd"}> : () -> ()
    %cst_20 = arith.constant dense<0.000000e+00> : vector<2x8x8xf32>
    %37 = tpu.matmul %35, %36, %cst_20 {dimension_numbers = #tpu.dot_dimension_numbers<[2], [1], [1], [2], [0, 0, 0, 1, 1, 2], [0], [0]>} : vector<2x8x8xf32>, vector<2x8x8xf32>, vector<2x8x8xf32> -> vector<2x8x8xf32>
    "tpu.trace_stop"() : () -> ()
    %c0_21 = arith.constant 0 : index
    %c0_22 = arith.constant 0 : index
    %c0_23 = arith.constant 0 : index
    %38 = vector.load %arg26[%c0_21, %c0_22, %c0_23] : memref<2x8x32xf32, #tpu.memory_space<vmem>>, vector<2x8x8xf32>
    tpu.vector_store %arg26[%c0_21, %c0_22, %c0_23], %37 {strides = array<i32>} : memref<2x8x32xf32, #tpu.memory_space<vmem>>, vector<2x8x8xf32>,
    %39 = vector.extract_strided_slice %19 {offsets = [0, 0, 8], sizes = [2, 8, 8], strides = [1, 1, 1]} : vector<2x8x32xf32> to vector<2x8x8xf32>
    %40 = vector.extract_strided_slice %20 {offsets = [0, 0, 8], sizes = [2, 8, 8], strides = [1, 1, 1]} : vector<2x8x32xf32> to vector<2x8x8xf32>
    "tpu.trace_start"() <{level = 10 : i32, message = "bqd,bkd->bqk"}> : () -> ()
    %cst_24 = arith.constant dense<0.000000e+00> : vector<2x8x8xf32>
    %41 = tpu.matmul %39, %40, %cst_24 {dimension_numbers = #tpu.dot_dimension_numbers<[2], [2], [1], [1], [0, 0, 0, 1, 1, 1], [0], [0]>} : vector<2x8x8xf32>, vector<2x8x8xf32>, vector<2x8x8xf32> -> vector<2x8x8xf32>
    "tpu.trace_stop"() : () -> ()
    %42 = arith.addf %41, %5 : vector<2x8x8xf32>
    %cst_25 = arith.constant dense<0xFF800000> : vector<2x8xf32>
    %43 = vector.multi_reduction <maximumf>, %42, %cst_25 [2] : vector<2x8x8xf32> to vector<2x8xf32>
    %44 = vector.shape_cast %43 : vector<2x8xf32> to vector<2x8x1xf32>
    %45 = vector.broadcast %44 : vector<2x8x1xf32> to vector<2x8x8xf32>
    %46 = arith.subf %42, %45 : vector<2x8x8xf32>
    %47 = math.exp %46 : vector<2x8x8xf32>
    %cst_26 = arith.constant dense<0.000000e+00> : vector<2x8xf32>
    %48 = vector.multi_reduction <add>, %47, %cst_26 [2] : vector<2x8x8xf32> to vector<2x8xf32>
    %49 = vector.shape_cast %48 : vector<2x8xf32> to vector<2x8x1xf32>
    %50 = tpu.reciprocal %49 {approx = true} : vector<2x8x1xf32> -> vector<2x8x1xf32>
    %51 = vector.broadcast %50 : vector<2x8x1xf32> to vector<2x8x8xf32>
    %52 = arith.mulf %47, %51 : vector<2x8x8xf32>
    %53 = vector.extract_strided_slice %21 {offsets = [0, 0, 8], sizes = [2, 8, 8], strides = [1, 1, 1]} : vector<2x8x32xf32> to vector<2x8x8xf32>
    "tpu.trace_start"() <{level = 10 : i32, message = "bqk,bkd->bqd"}> : () -> ()
    %cst_27 = arith.constant dense<0.000000e+00> : vector<2x8x8xf32>
    %54 = tpu.matmul %52, %53, %cst_27 {dimension_numbers = #tpu.dot_dimension_numbers<[2], [1], [1], [2], [0, 0, 0, 1, 1, 2], [0], [0]>} : vector<2x8x8xf32>, vector<2x8x8xf32>, vector<2x8x8xf32> -> vector<2x8x8xf32>
    "tpu.trace_stop"() : () -> ()
    %c0_28 = arith.constant 0 : index
    %c0_29 = arith.constant 0 : index
    %c8 = arith.constant 8 : index
    %55 = vector.load %arg26[%c0_28, %c0_29, %c8] : memref<2x8x32xf32, #tpu.memory_space<vmem>>, vector<2x8x8xf32>
    tpu.vector_store %arg26[%c0_28, %c0_29, %c8], %54 {strides = array<i32>} : memref<2x8x32xf32, #tpu.memory_space<vmem>>, vector<2x8x8xf32>,
    %56 = vector.extract_strided_slice %19 {offsets = [0, 0, 16], sizes = [2, 8, 8], strides = [1, 1, 1]} : vector<2x8x32xf32> to vector<2x8x8xf32>
    %57 = vector.extract_strided_slice %20 {offsets = [0, 0, 16], sizes = [2, 8, 8], strides = [1, 1, 1]} : vector<2x8x32xf32> to vector<2x8x8xf32>
    "tpu.trace_start"() <{level = 10 : i32, message = "bqd,bkd->bqk"}> : () -> ()
    %cst_30 = arith.constant dense<0.000000e+00> : vector<2x8x8xf32>
    %58 = tpu.matmul %56, %57, %cst_30 {dimension_numbers = #tpu.dot_dimension_numbers<[2], [2], [1], [1], [0, 0, 0, 1, 1, 1], [0], [0]>} : vector<2x8x8xf32>, vector<2x8x8xf32>, vector<2x8x8xf32> -> vector<2x8x8xf32>
    "tpu.trace_stop"() : () -> ()
    %59 = arith.addf %58, %5 : vector<2x8x8xf32>
    %cst_31 = arith.constant dense<0xFF800000> : vector<2x8xf32>
    %60 = vector.multi_reduction <maximumf>, %59, %cst_31 [2] : vector<2x8x8xf32> to vector<2x8xf32>
    %61 = vector.shape_cast %60 : vector<2x8xf32> to vector<2x8x1xf32>
    %62 = vector.broadcast %61 : vector<2x8x1xf32> to vector<2x8x8xf32>
    %63 = arith.subf %59, %62 : vector<2x8x8xf32>
    %64 = math.exp %63 : vector<2x8x8xf32>
    %cst_32 = arith.constant dense<0.000000e+00> : vector<2x8xf32>
    %65 = vector.multi_reduction <add>, %64, %cst_32 [2] : vector<2x8x8xf32> to vector<2x8xf32>
    %66 = vector.shape_cast %65 : vector<2x8xf32> to vector<2x8x1xf32>
    %67 = tpu.reciprocal %66 {approx = true} : vector<2x8x1xf32> -> vector<2x8x1xf32>
    %68 = vector.broadcast %67 : vector<2x8x1xf32> to vector<2x8x8xf32>
    %69 = arith.mulf %64, %68 : vector<2x8x8xf32>
    %70 = vector.extract_strided_slice %21 {offsets = [0, 0, 16], sizes = [2, 8, 8], strides = [1, 1, 1]} : vector<2x8x32xf32> to vector<2x8x8xf32>
    "tpu.trace_start"() <{level = 10 : i32, message = "bqk,bkd->bqd"}> : () -> ()
    %cst_33 = arith.constant dense<0.000000e+00> : vector<2x8x8xf32>
    %71 = tpu.matmul %69, %70, %cst_33 {dimension_numbers = #tpu.dot_dimension_numbers<[2], [1], [1], [2], [0, 0, 0, 1, 1, 2], [0], [0]>} : vector<2x8x8xf32>, vector<2x8x8xf32>, vector<2x8x8xf32> -> vector<2x8x8xf32>
    "tpu.trace_stop"() : () -> ()
    %c0_34 = arith.constant 0 : index
    %c0_35 = arith.constant 0 : index
    %c16 = arith.constant 16 : index
    %72 = vector.load %arg26[%c0_34, %c0_35, %c16] : memref<2x8x32xf32, #tpu.memory_space<vmem>>, vector<2x8x8xf32>
    tpu.vector_store %arg26[%c0_34, %c0_35, %c16], %71 {strides = array<i32>} : memref<2x8x32xf32, #tpu.memory_space<vmem>>, vector<2x8x8xf32>,
    %73 = vector.extract_strided_slice %19 {offsets = [0, 0, 24], sizes = [2, 8, 8], strides = [1, 1, 1]} : vector<2x8x32xf32> to vector<2x8x8xf32>
    %74 = vector.extract_strided_slice %20 {offsets = [0, 0, 24], sizes = [2, 8, 8], strides = [1, 1, 1]} : vector<2x8x32xf32> to vector<2x8x8xf32>
    "tpu.trace_start"() <{level = 10 : i32, message = "bqd,bkd->bqk"}> : () -> ()
    %cst_36 = arith.constant dense<0.000000e+00> : vector<2x8x8xf32>
    %75 = tpu.matmul %73, %74, %cst_36 {dimension_numbers = #tpu.dot_dimension_numbers<[2], [2], [1], [1], [0, 0, 0, 1, 1, 1], [0], [0]>} : vector<2x8x8xf32>, vector<2x8x8xf32>, vector<2x8x8xf32> -> vector<2x8x8xf32>
    "tpu.trace_stop"() : () -> ()
    %76 = arith.addf %75, %5 : vector<2x8x8xf32>
    %cst_37 = arith.constant dense<0xFF800000> : vector<2x8xf32>
    %77 = vector.multi_reduction <maximumf>, %76, %cst_37 [2] : vector<2x8x8xf32> to vector<2x8xf32>
    %78 = vector.shape_cast %77 : vector<2x8xf32> to vector<2x8x1xf32>
    %79 = vector.broadcast %78 : vector<2x8x1xf32> to vector<2x8x8xf32>
    %80 = arith.subf %76, %79 : vector<2x8x8xf32>
    %81 = math.exp %80 : vector<2x8x8xf32>
    %cst_38 = arith.constant dense<0.000000e+00> : vector<2x8xf32>
    %82 = vector.multi_reduction <add>, %81, %cst_38 [2] : vector<2x8x8xf32> to vector<2x8xf32>
    %83 = vector.shape_cast %82 : vector<2x8xf32> to vector<2x8x1xf32>
    %84 = tpu.reciprocal %83 {approx = true} : vector<2x8x1xf32> -> vector<2x8x1xf32>
    %85 = vector.broadcast %84 : vector<2x8x1xf32> to vector<2x8x8xf32>
    %86 = arith.mulf %81, %85 : vector<2x8x8xf32>
    %87 = vector.extract_strided_slice %21 {offsets = [0, 0, 24], sizes = [2, 8, 8], strides = [1, 1, 1]} : vector<2x8x32xf32> to vector<2x8x8xf32>
    "tpu.trace_start"() <{level = 10 : i32, message = "bqk,bkd->bqd"}> : () -> ()
    %cst_39 = arith.constant dense<0.000000e+00> : vector<2x8x8xf32>
    %88 = tpu.matmul %86, %87, %cst_39 {dimension_numbers = #tpu.dot_dimension_numbers<[2], [1], [1], [2], [0, 0, 0, 1, 1, 2], [0], [0]>} : vector<2x8x8xf32>, vector<2x8x8xf32>, vector<2x8x8xf32> -> vector<2x8x8xf32>
    "tpu.trace_stop"() : () -> ()
    %c0_40 = arith.constant 0 : index
    %c0_41 = arith.constant 0 : index
    %c24 = arith.constant 24 : index
    %89 = vector.load %arg26[%c0_40, %c0_41, %c24] : memref<2x8x32xf32, #tpu.memory_space<vmem>>, vector<2x8x8xf32>
    tpu.vector_store %arg26[%c0_40, %c0_41, %c24], %88 {strides = array<i32>} : memref<2x8x32xf32, #tpu.memory_space<vmem>>, vector<2x8x8xf32>,
    %c0_42 = arith.constant 0 : index
    %c0_43 = arith.constant 0 : index
    %c0_44 = arith.constant 0 : index
    %90 = vector.load %arg26[%c0_42, %c0_43, %c0_44] : memref<2x8x32xf32, #tpu.memory_space<vmem>>, vector<2x8x32xf32>
    %91 = vector.shape_cast %90 : vector<2x8x32xf32> to vector<16x32xf32>
    %c0_45 = arith.constant 0 : index
    %c0_46 = arith.constant 0 : index
    %c0_47 = arith.constant 0 : index
    %92 = vector.load %arg7[%c0_45, %c0_46, %c0_47] : memref<1x32x32xf32, #tpu.memory_space<vmem>>, vector<1x32x32xf32>
    %93 = vector.shape_cast %92 : vector<1x32x32xf32> to vector<32x32xf32>
    %cst_48 = arith.constant dense<0.000000e+00> : vector<16x32xf32>
    %94 = tpu.matmul %91, %93, %cst_48 {dimension_numbers = #tpu.dot_dimension_numbers<[1], [0], [0], [1], [0, 0, 1, 1], [], []>} : vector<16x32xf32>, vector<32x32xf32>, vector<16x32xf32> -> vector<16x32xf32>
    %c0_49 = arith.constant 0 : index
    %c0_50 = arith.constant 0 : index
    %c0_51 = arith.constant 0 : index
    %95 = vector.load %arg8[%c0_49, %c0_50, %c0_51] : memref<1x1x32xf32, #tpu.memory_space<vmem>>, vector<1x1x32xf32>
    %96 = vector.shape_cast %95 : vector<1x1x32xf32> to vector<1x32xf32>
    %97 = vector.broadcast %96 : vector<1x32xf32> to vector<16x32xf32>
    %98 = arith.addf %94, %97 : vector<16x32xf32>
    %99 = arith.addf %3, %98 : vector<16x32xf32>
    %cst_52 = arith.constant dense<0.000000e+00> : vector<16xf32>
    %100 = vector.multi_reduction <add>, %99, %cst_52 [1] : vector<16x32xf32> to vector<16xf32>
    %101 = vector.shape_cast %100 : vector<16xf32> to vector<16x1xf32>
    %cst_53 = arith.constant 3.200000e+01 : f32
    %102 = vector.broadcast %cst_53 : f32 to vector<16x1xf32>
    %103 = arith.divf %101, %102 : vector<16x1xf32>
    %104 = arith.mulf %99, %99 : vector<16x32xf32>
    %cst_54 = arith.constant dense<0.000000e+00> : vector<16xf32>
    %105 = vector.multi_reduction <add>, %104, %cst_54 [1] : vector<16x32xf32> to vector<16xf32>
    %106 = vector.shape_cast %105 : vector<16xf32> to vector<16x1xf32>
    %cst_55 = arith.constant 3.200000e+01 : f32
    %107 = vector.broadcast %cst_55 : f32 to vector<16x1xf32>
    %108 = arith.divf %106, %107 : vector<16x1xf32>
    %109 = arith.mulf %103, %103 : vector<16x1xf32>
    %110 = arith.subf %108, %109 : vector<16x1xf32>
    %111 = vector.broadcast %103 : vector<16x1xf32> to vector<16x32xf32>
    %112 = arith.subf %99, %111 : vector<16x32xf32>
    %cst_56 = arith.constant 9.99999974E-6 : f32
    %113 = vector.broadcast %cst_56 : f32 to vector<16x1xf32>
    %114 = arith.addf %110, %113 : vector<16x1xf32>
    %115 = math.rsqrt %114 : vector<16x1xf32>
    %116 = vector.broadcast %115 : vector<16x1xf32> to vector<16x32xf32>
    %117 = arith.mulf %112, %116 : vector<16x32xf32>
    %c0_57 = arith.constant 0 : index
    %c0_58 = arith.constant 0 : index
    %c0_59 = arith.constant 0 : index
    %118 = vector.load %arg15[%c0_57, %c0_58, %c0_59] : memref<1x1x32xf32, #tpu.memory_space<vmem>>, vector<1x1x32xf32>
    %119 = vector.shape_cast %118 : vector<1x1x32xf32> to vector<1x32xf32>
    %120 = vector.broadcast %119 : vector<1x32xf32> to vector<16x32xf32>
    %121 = arith.mulf %117, %120 : vector<16x32xf32>
    %c0_60 = arith.constant 0 : index
    %c0_61 = arith.constant 0 : index
    %c0_62 = arith.constant 0 : index
    %122 = vector.load %arg16[%c0_60, %c0_61, %c0_62] : memref<1x1x32xf32, #tpu.memory_space<vmem>>, vector<1x1x32xf32>
    %123 = vector.shape_cast %122 : vector<1x1x32xf32> to vector<1x32xf32>
    %124 = vector.broadcast %123 : vector<1x32xf32> to vector<16x32xf32>
    %125 = arith.addf %121, %124 : vector<16x32xf32>
    %c0_63 = arith.constant 0 : index
    %c0_64 = arith.constant 0 : index
    %c0_65 = arith.constant 0 : index
    %126 = vector.load %arg9[%c0_63, %c0_64, %c0_65] : memref<1x32x32xf32, #tpu.memory_space<vmem>>, vector<1x32x32xf32>
    %127 = vector.shape_cast %126 : vector<1x32x32xf32> to vector<32x32xf32>
    %cst_66 = arith.constant dense<0.000000e+00> : vector<16x32xf32>
    %128 = tpu.matmul %125, %127, %cst_66 {dimension_numbers = #tpu.dot_dimension_numbers<[1], [0], [0], [1], [0, 0, 1, 1], [], []>} : vector<16x32xf32>, vector<32x32xf32>, vector<16x32xf32> -> vector<16x32xf32>
    %c0_67 = arith.constant 0 : index
    %c0_68 = arith.constant 0 : index
    %c0_69 = arith.constant 0 : index
    %129 = vector.load %arg10[%c0_67, %c0_68, %c0_69] : memref<1x1x32xf32, #tpu.memory_space<vmem>>, vector<1x1x32xf32>
    %130 = vector.shape_cast %129 : vector<1x1x32xf32> to vector<1x32xf32>
    %131 = vector.broadcast %130 : vector<1x32xf32> to vector<16x32xf32>
    %132 = arith.addf %128, %131 : vector<16x32xf32>
    %cst_70 = arith.constant 0.353553385 : f32
    %133 = vector.broadcast %cst_70 : f32 to vector<16x32xf32>
    %134 = arith.mulf %132, %133 : vector<16x32xf32>
    %c0_71 = arith.constant 0 : index
    %c0_72 = arith.constant 0 : index
    %c0_73 = arith.constant 0 : index
    %135 = vector.load %arg11[%c0_71, %c0_72, %c0_73] : memref<1x32x64xf32, #tpu.memory_space<vmem>>, vector<1x32x64xf32>
    %136 = vector.shape_cast %135 : vector<1x32x64xf32> to vector<32x64xf32>
    %cst_74 = arith.constant dense<0.000000e+00> : vector<16x64xf32>
    %137 = tpu.matmul %4, %136, %cst_74 {dimension_numbers = #tpu.dot_dimension_numbers<[1], [0], [0], [1], [0, 0, 1, 1], [], []>} : vector<16x32xf32>, vector<32x64xf32>, vector<16x64xf32> -> vector<16x64xf32>
    %c0_75 = arith.constant 0 : index
    %c0_76 = arith.constant 0 : index
    %c0_77 = arith.constant 0 : index
    %138 = vector.load %arg12[%c0_75, %c0_76, %c0_77] : memref<1x1x64xf32, #tpu.memory_space<vmem>>, vector<1x1x64xf32>
    %139 = vector.shape_cast %138 : vector<1x1x64xf32> to vector<1x64xf32>
    %140 = vector.broadcast %139 : vector<1x64xf32> to vector<16x64xf32>
    %141 = arith.addf %137, %140 : vector<16x64xf32>
    %142 = vector.extract_strided_slice %141 {offsets = [0, 0], sizes = [16, 32], strides = [1, 1]} : vector<16x64xf32> to vector<16x32xf32>
    %143 = vector.extract_strided_slice %141 {offsets = [0, 32], sizes = [16, 32], strides = [1, 1]} : vector<16x64xf32> to vector<16x32xf32>
    %144 = vector.shape_cast %134 : vector<16x32xf32> to vector<2x8x32xf32>
    %145 = vector.shape_cast %142 : vector<16x32xf32> to vector<2x8x32xf32>
    %146 = vector.shape_cast %143 : vector<16x32xf32> to vector<2x8x32xf32>
    %147 = vector.extract_strided_slice %144 {offsets = [0, 0, 0], sizes = [2, 8, 8], strides = [1, 1, 1]} : vector<2x8x32xf32> to vector<2x8x8xf32>
    %148 = vector.extract_strided_slice %145 {offsets = [0, 0, 0], sizes = [2, 8, 8], strides = [1, 1, 1]} : vector<2x8x32xf32> to vector<2x8x8xf32>
    "tpu.trace_start"() <{level = 10 : i32, message = "bqd,bkd->bqk"}> : () -> ()
    %cst_78 = arith.constant dense<0.000000e+00> : vector<2x8x8xf32>
    %149 = tpu.matmul %147, %148, %cst_78 {dimension_numbers = #tpu.dot_dimension_numbers<[2], [2], [1], [1], [0, 0, 0, 1, 1, 1], [0], [0]>} : vector<2x8x8xf32>, vector<2x8x8xf32>, vector<2x8x8xf32> -> vector<2x8x8xf32>
    "tpu.trace_stop"() : () -> ()
    %150 = arith.addf %149, %6 : vector<2x8x8xf32>
    %cst_79 = arith.constant dense<0xFF800000> : vector<2x8xf32>
    %151 = vector.multi_reduction <maximumf>, %150, %cst_79 [2] : vector<2x8x8xf32> to vector<2x8xf32>
    %152 = vector.shape_cast %151 : vector<2x8xf32> to vector<2x8x1xf32>
    %153 = vector.broadcast %152 : vector<2x8x1xf32> to vector<2x8x8xf32>
    %154 = arith.subf %150, %153 : vector<2x8x8xf32>
    %155 = math.exp %154 : vector<2x8x8xf32>
    %cst_80 = arith.constant dense<0.000000e+00> : vector<2x8xf32>
    %156 = vector.multi_reduction <add>, %155, %cst_80 [2] : vector<2x8x8xf32> to vector<2x8xf32>
    %157 = vector.shape_cast %156 : vector<2x8xf32> to vector<2x8x1xf32>
    %158 = tpu.reciprocal %157 {approx = true} : vector<2x8x1xf32> -> vector<2x8x1xf32>
    %159 = vector.broadcast %158 : vector<2x8x1xf32> to vector<2x8x8xf32>
    %160 = arith.mulf %155, %159 : vector<2x8x8xf32>
    %161 = vector.extract_strided_slice %146 {offsets = [0, 0, 0], sizes = [2, 8, 8], strides = [1, 1, 1]} : vector<2x8x32xf32> to vector<2x8x8xf32>
    "tpu.trace_start"() <{level = 10 : i32, message = "bqk,bkd->bqd"}> : () -> ()
    %cst_81 = arith.constant dense<0.000000e+00> : vector<2x8x8xf32>
    %162 = tpu.matmul %160, %161, %cst_81 {dimension_numbers = #tpu.dot_dimension_numbers<[2], [1], [1], [2], [0, 0, 0, 1, 1, 2], [0], [0]>} : vector<2x8x8xf32>, vector<2x8x8xf32>, vector<2x8x8xf32> -> vector<2x8x8xf32>
    "tpu.trace_stop"() : () -> ()
    %c0_82 = arith.constant 0 : index
    %c0_83 = arith.constant 0 : index
    %c0_84 = arith.constant 0 : index
    %163 = vector.load %arg26[%c0_82, %c0_83, %c0_84] : memref<2x8x32xf32, #tpu.memory_space<vmem>>, vector<2x8x8xf32>
    tpu.vector_store %arg26[%c0_82, %c0_83, %c0_84], %162 {strides = array<i32>} : memref<2x8x32xf32, #tpu.memory_space<vmem>>, vector<2x8x8xf32>,
    %164 = vector.extract_strided_slice %144 {offsets = [0, 0, 8], sizes = [2, 8, 8], strides = [1, 1, 1]} : vector<2x8x32xf32> to vector<2x8x8xf32>
    %165 = vector.extract_strided_slice %145 {offsets = [0, 0, 8], sizes = [2, 8, 8], strides = [1, 1, 1]} : vector<2x8x32xf32> to vector<2x8x8xf32>
    "tpu.trace_start"() <{level = 10 : i32, message = "bqd,bkd->bqk"}> : () -> ()
    %cst_85 = arith.constant dense<0.000000e+00> : vector<2x8x8xf32>
    %166 = tpu.matmul %164, %165, %cst_85 {dimension_numbers = #tpu.dot_dimension_numbers<[2], [2], [1], [1], [0, 0, 0, 1, 1, 1], [0], [0]>} : vector<2x8x8xf32>, vector<2x8x8xf32>, vector<2x8x8xf32> -> vector<2x8x8xf32>
    "tpu.trace_stop"() : () -> ()
    %167 = arith.addf %166, %6 : vector<2x8x8xf32>
    %cst_86 = arith.constant dense<0xFF800000> : vector<2x8xf32>
    %168 = vector.multi_reduction <maximumf>, %167, %cst_86 [2] : vector<2x8x8xf32> to vector<2x8xf32>
    %169 = vector.shape_cast %168 : vector<2x8xf32> to vector<2x8x1xf32>
    %170 = vector.broadcast %169 : vector<2x8x1xf32> to vector<2x8x8xf32>
    %171 = arith.subf %167, %170 : vector<2x8x8xf32>
    %172 = math.exp %171 : vector<2x8x8xf32>
    %cst_87 = arith.constant dense<0.000000e+00> : vector<2x8xf32>
    %173 = vector.multi_reduction <add>, %172, %cst_87 [2] : vector<2x8x8xf32> to vector<2x8xf32>
    %174 = vector.shape_cast %173 : vector<2x8xf32> to vector<2x8x1xf32>
    %175 = tpu.reciprocal %174 {approx = true} : vector<2x8x1xf32> -> vector<2x8x1xf32>
    %176 = vector.broadcast %175 : vector<2x8x1xf32> to vector<2x8x8xf32>
    %177 = arith.mulf %172, %176 : vector<2x8x8xf32>
    %178 = vector.extract_strided_slice %146 {offsets = [0, 0, 8], sizes = [2, 8, 8], strides = [1, 1, 1]} : vector<2x8x32xf32> to vector<2x8x8xf32>
    "tpu.trace_start"() <{level = 10 : i32, message = "bqk,bkd->bqd"}> : () -> ()
    %cst_88 = arith.constant dense<0.000000e+00> : vector<2x8x8xf32>
    %179 = tpu.matmul %177, %178, %cst_88 {dimension_numbers = #tpu.dot_dimension_numbers<[2], [1], [1], [2], [0, 0, 0, 1, 1, 2], [0], [0]>} : vector<2x8x8xf32>, vector<2x8x8xf32>, vector<2x8x8xf32> -> vector<2x8x8xf32>
    "tpu.trace_stop"() : () -> ()
    %c0_89 = arith.constant 0 : index
    %c0_90 = arith.constant 0 : index
    %c8_91 = arith.constant 8 : index
    %180 = vector.load %arg26[%c0_89, %c0_90, %c8_91] : memref<2x8x32xf32, #tpu.memory_space<vmem>>, vector<2x8x8xf32>
    tpu.vector_store %arg26[%c0_89, %c0_90, %c8_91], %179 {strides = array<i32>} : memref<2x8x32xf32, #tpu.memory_space<vmem>>, vector<2x8x8xf32>,
    %181 = vector.extract_strided_slice %144 {offsets = [0, 0, 16], sizes = [2, 8, 8], strides = [1, 1, 1]} : vector<2x8x32xf32> to vector<2x8x8xf32>
    %182 = vector.extract_strided_slice %145 {offsets = [0, 0, 16], sizes = [2, 8, 8], strides = [1, 1, 1]} : vector<2x8x32xf32> to vector<2x8x8xf32>
    "tpu.trace_start"() <{level = 10 : i32, message = "bqd,bkd->bqk"}> : () -> ()
    %cst_92 = arith.constant dense<0.000000e+00> : vector<2x8x8xf32>
    %183 = tpu.matmul %181, %182, %cst_92 {dimension_numbers = #tpu.dot_dimension_numbers<[2], [2], [1], [1], [0, 0, 0, 1, 1, 1], [0], [0]>} : vector<2x8x8xf32>, vector<2x8x8xf32>, vector<2x8x8xf32> -> vector<2x8x8xf32>
    "tpu.trace_stop"() : () -> ()
    %184 = arith.addf %183, %6 : vector<2x8x8xf32>
    %cst_93 = arith.constant dense<0xFF800000> : vector<2x8xf32>
    %185 = vector.multi_reduction <maximumf>, %184, %cst_93 [2] : vector<2x8x8xf32> to vector<2x8xf32>
    %186 = vector.shape_cast %185 : vector<2x8xf32> to vector<2x8x1xf32>
    %187 = vector.broadcast %186 : vector<2x8x1xf32> to vector<2x8x8xf32>
    %188 = arith.subf %184, %187 : vector<2x8x8xf32>
    %189 = math.exp %188 : vector<2x8x8xf32>
    %cst_94 = arith.constant dense<0.000000e+00> : vector<2x8xf32>
    %190 = vector.multi_reduction <add>, %189, %cst_94 [2] : vector<2x8x8xf32> to vector<2x8xf32>
    %191 = vector.shape_cast %190 : vector<2x8xf32> to vector<2x8x1xf32>
    %192 = tpu.reciprocal %191 {approx = true} : vector<2x8x1xf32> -> vector<2x8x1xf32>
    %193 = vector.broadcast %192 : vector<2x8x1xf32> to vector<2x8x8xf32>
    %194 = arith.mulf %189, %193 : vector<2x8x8xf32>
    %195 = vector.extract_strided_slice %146 {offsets = [0, 0, 16], sizes = [2, 8, 8], strides = [1, 1, 1]} : vector<2x8x32xf32> to vector<2x8x8xf32>
    "tpu.trace_start"() <{level = 10 : i32, message = "bqk,bkd->bqd"}> : () -> ()
    %cst_95 = arith.constant dense<0.000000e+00> : vector<2x8x8xf32>
    %196 = tpu.matmul %194, %195, %cst_95 {dimension_numbers = #tpu.dot_dimension_numbers<[2], [1], [1], [2], [0, 0, 0, 1, 1, 2], [0], [0]>} : vector<2x8x8xf32>, vector<2x8x8xf32>, vector<2x8x8xf32> -> vector<2x8x8xf32>
    "tpu.trace_stop"() : () -> ()
    %c0_96 = arith.constant 0 : index
    %c0_97 = arith.constant 0 : index
    %c16_98 = arith.constant 16 : index
    %197 = vector.load %arg26[%c0_96, %c0_97, %c16_98] : memref<2x8x32xf32, #tpu.memory_space<vmem>>, vector<2x8x8xf32>
    tpu.vector_store %arg26[%c0_96, %c0_97, %c16_98], %196 {strides = array<i32>} : memref<2x8x32xf32, #tpu.memory_space<vmem>>, vector<2x8x8xf32>,
    %198 = vector.extract_strided_slice %144 {offsets = [0, 0, 24], sizes = [2, 8, 8], strides = [1, 1, 1]} : vector<2x8x32xf32> to vector<2x8x8xf32>
    %199 = vector.extract_strided_slice %145 {offsets = [0, 0, 24], sizes = [2, 8, 8], strides = [1, 1, 1]} : vector<2x8x32xf32> to vector<2x8x8xf32>
    "tpu.trace_start"() <{level = 10 : i32, message = "bqd,bkd->bqk"}> : () -> ()
    %cst_99 = arith.constant dense<0.000000e+00> : vector<2x8x8xf32>
    %200 = tpu.matmul %198, %199, %cst_99 {dimension_numbers = #tpu.dot_dimension_numbers<[2], [2], [1], [1], [0, 0, 0, 1, 1, 1], [0], [0]>} : vector<2x8x8xf32>, vector<2x8x8xf32>, vector<2x8x8xf32> -> vector<2x8x8xf32>
    "tpu.trace_stop"() : () -> ()
    %201 = arith.addf %200, %6 : vector<2x8x8xf32>
    %cst_100 = arith.constant dense<0xFF800000> : vector<2x8xf32>
    %202 = vector.multi_reduction <maximumf>, %201, %cst_100 [2] : vector<2x8x8xf32> to vector<2x8xf32>
    %203 = vector.shape_cast %202 : vector<2x8xf32> to vector<2x8x1xf32>
    %204 = vector.broadcast %203 : vector<2x8x1xf32> to vector<2x8x8xf32>
    %205 = arith.subf %201, %204 : vector<2x8x8xf32>
    %206 = math.exp %205 : vector<2x8x8xf32>
    %cst_101 = arith.constant dense<0.000000e+00> : vector<2x8xf32>
    %207 = vector.multi_reduction <add>, %206, %cst_101 [2] : vector<2x8x8xf32> to vector<2x8xf32>
    %208 = vector.shape_cast %207 : vector<2x8xf32> to vector<2x8x1xf32>
    %209 = tpu.reciprocal %208 {approx = true} : vector<2x8x1xf32> -> vector<2x8x1xf32>
    %210 = vector.broadcast %209 : vector<2x8x1xf32> to vector<2x8x8xf32>
    %211 = arith.mulf %206, %210 : vector<2x8x8xf32>
    %212 = vector.extract_strided_slice %146 {offsets = [0, 0, 24], sizes = [2, 8, 8], strides = [1, 1, 1]} : vector<2x8x32xf32> to vector<2x8x8xf32>
    "tpu.trace_start"() <{level = 10 : i32, message = "bqk,bkd->bqd"}> : () -> ()
    %cst_102 = arith.constant dense<0.000000e+00> : vector<2x8x8xf32>
    %213 = tpu.matmul %211, %212, %cst_102 {dimension_numbers = #tpu.dot_dimension_numbers<[2], [1], [1], [2], [0, 0, 0, 1, 1, 2], [0], [0]>} : vector<2x8x8xf32>, vector<2x8x8xf32>, vector<2x8x8xf32> -> vector<2x8x8xf32>
    "tpu.trace_stop"() : () -> ()
    %c0_103 = arith.constant 0 : index
    %c0_104 = arith.constant 0 : index
    %c24_105 = arith.constant 24 : index
    %214 = vector.load %arg26[%c0_103, %c0_104, %c24_105] : memref<2x8x32xf32, #tpu.memory_space<vmem>>, vector<2x8x8xf32>
    tpu.vector_store %arg26[%c0_103, %c0_104, %c24_105], %213 {strides = array<i32>} : memref<2x8x32xf32, #tpu.memory_space<vmem>>, vector<2x8x8xf32>,
    %c0_106 = arith.constant 0 : index
    %c0_107 = arith.constant 0 : index
    %c0_108 = arith.constant 0 : index
    %215 = vector.load %arg26[%c0_106, %c0_107, %c0_108] : memref<2x8x32xf32, #tpu.memory_space<vmem>>, vector<2x8x32xf32>
    %216 = vector.shape_cast %215 : vector<2x8x32xf32> to vector<16x32xf32>
    %c0_109 = arith.constant 0 : index
    %c0_110 = arith.constant 0 : index
    %c0_111 = arith.constant 0 : index
    %217 = vector.load %arg13[%c0_109, %c0_110, %c0_111] : memref<1x32x32xf32, #tpu.memory_space<vmem>>, vector<1x32x32xf32>
    %218 = vector.shape_cast %217 : vector<1x32x32xf32> to vector<32x32xf32>
    %cst_112 = arith.constant dense<0.000000e+00> : vector<16x32xf32>
    %219 = tpu.matmul %216, %218, %cst_112 {dimension_numbers = #tpu.dot_dimension_numbers<[1], [0], [0], [1], [0, 0, 1, 1], [], []>} : vector<16x32xf32>, vector<32x32xf32>, vector<16x32xf32> -> vector<16x32xf32>
    %c0_113 = arith.constant 0 : index
    %c0_114 = arith.constant 0 : index
    %c0_115 = arith.constant 0 : index
    %220 = vector.load %arg14[%c0_113, %c0_114, %c0_115] : memref<1x1x32xf32, #tpu.memory_space<vmem>>, vector<1x1x32xf32>
    %221 = vector.shape_cast %220 : vector<1x1x32xf32> to vector<1x32xf32>
    %222 = vector.broadcast %221 : vector<1x32xf32> to vector<16x32xf32>
    %223 = arith.addf %219, %222 : vector<16x32xf32>
    %224 = arith.addf %125, %223 : vector<16x32xf32>
    %cst_116 = arith.constant dense<0.000000e+00> : vector<16xf32>
    %225 = vector.multi_reduction <add>, %224, %cst_116 [1] : vector<16x32xf32> to vector<16xf32>
    %226 = vector.shape_cast %225 : vector<16xf32> to vector<16x1xf32>
    %cst_117 = arith.constant 3.200000e+01 : f32
    %227 = vector.broadcast %cst_117 : f32 to vector<16x1xf32>
    %228 = arith.divf %226, %227 : vector<16x1xf32>
    %229 = arith.mulf %224, %224 : vector<16x32xf32>
    %cst_118 = arith.constant dense<0.000000e+00> : vector<16xf32>
    %230 = vector.multi_reduction <add>, %229, %cst_118 [1] : vector<16x32xf32> to vector<16xf32>
    %231 = vector.shape_cast %230 : vector<16xf32> to vector<16x1xf32>
    %cst_119 = arith.constant 3.200000e+01 : f32
    %232 = vector.broadcast %cst_119 : f32 to vector<16x1xf32>
    %233 = arith.divf %231, %232 : vector<16x1xf32>
    %234 = arith.mulf %228, %228 : vector<16x1xf32>
    %235 = arith.subf %233, %234 : vector<16x1xf32>
    %236 = vector.broadcast %228 : vector<16x1xf32> to vector<16x32xf32>
    %237 = arith.subf %224, %236 : vector<16x32xf32>
    %cst_120 = arith.constant 9.99999974E-6 : f32
    %238 = vector.broadcast %cst_120 : f32 to vector<16x1xf32>
    %239 = arith.addf %235, %238 : vector<16x1xf32>
    %240 = math.rsqrt %239 : vector<16x1xf32>
    %241 = vector.broadcast %240 : vector<16x1xf32> to vector<16x32xf32>
    %242 = arith.mulf %237, %241 : vector<16x32xf32>
    %c0_121 = arith.constant 0 : index
    %c0_122 = arith.constant 0 : index
    %c0_123 = arith.constant 0 : index
    %243 = vector.load %arg17[%c0_121, %c0_122, %c0_123] : memref<1x1x32xf32, #tpu.memory_space<vmem>>, vector<1x1x32xf32>
    %244 = vector.shape_cast %243 : vector<1x1x32xf32> to vector<1x32xf32>
    %245 = vector.broadcast %244 : vector<1x32xf32> to vector<16x32xf32>
    %246 = arith.mulf %242, %245 : vector<16x32xf32>
    %c0_124 = arith.constant 0 : index
    %c0_125 = arith.constant 0 : index
    %c0_126 = arith.constant 0 : index
    %247 = vector.load %arg18[%c0_124, %c0_125, %c0_126] : memref<1x1x32xf32, #tpu.memory_space<vmem>>, vector<1x1x32xf32>
    %248 = vector.shape_cast %247 : vector<1x1x32xf32> to vector<1x32xf32>
    %249 = vector.broadcast %248 : vector<1x32xf32> to vector<16x32xf32>
    %250 = arith.addf %246, %249 : vector<16x32xf32>
    %c0_127 = arith.constant 0 : index
    %c0_128 = arith.constant 0 : index
    %c0_129 = arith.constant 0 : index
    %251 = vector.load %arg21[%c0_127, %c0_128, %c0_129] : memref<1x32x64xf32, #tpu.memory_space<vmem>>, vector<1x32x64xf32>
    %252 = vector.shape_cast %251 : vector<1x32x64xf32> to vector<32x64xf32>
    %cst_130 = arith.constant dense<0.000000e+00> : vector<16x64xf32>
    %253 = tpu.matmul %250, %252, %cst_130 {dimension_numbers = #tpu.dot_dimension_numbers<[1], [0], [0], [1], [0, 0, 1, 1], [], []>} : vector<16x32xf32>, vector<32x64xf32>, vector<16x64xf32> -> vector<16x64xf32>
    %c0_131 = arith.constant 0 : index
    %c0_132 = arith.constant 0 : index
    %c0_133 = arith.constant 0 : index
    %254 = vector.load %arg22[%c0_131, %c0_132, %c0_133] : memref<1x1x64xf32, #tpu.memory_space<vmem>>, vector<1x1x64xf32>
    %255 = vector.shape_cast %254 : vector<1x1x64xf32> to vector<1x64xf32>
    %256 = vector.broadcast %255 : vector<1x64xf32> to vector<16x64xf32>
    %257 = arith.addf %253, %256 : vector<16x64xf32>
    %cst_134 = arith.constant 0.000000e+00 : f32
    %258 = vector.broadcast %cst_134 : f32 to vector<16x64xf32>
    %259 = arith.maximumf %257, %258 : vector<16x64xf32>
    %c0_135 = arith.constant 0 : index
    %c0_136 = arith.constant 0 : index
    %c0_137 = arith.constant 0 : index
    %260 = vector.load %arg23[%c0_135, %c0_136, %c0_137] : memref<1x64x32xf32, #tpu.memory_space<vmem>>, vector<1x64x32xf32>
    %261 = vector.shape_cast %260 : vector<1x64x32xf32> to vector<64x32xf32>
    %cst_138 = arith.constant dense<0.000000e+00> : vector<16x32xf32>
    %262 = tpu.matmul %259, %261, %cst_138 {dimension_numbers = #tpu.dot_dimension_numbers<[1], [0], [0], [1], [0, 0, 1, 1], [], []>} : vector<16x64xf32>, vector<64x32xf32>, vector<16x32xf32> -> vector<16x32xf32>
    %c0_139 = arith.constant 0 : index
    %c0_140 = arith.constant 0 : index
    %c0_141 = arith.constant 0 : index
    %263 = vector.load %arg24[%c0_139, %c0_140, %c0_141] : memref<1x1x32xf32, #tpu.memory_space<vmem>>, vector<1x1x32xf32>
    %264 = vector.shape_cast %263 : vector<1x1x32xf32> to vector<1x32xf32>
    %265 = vector.broadcast %264 : vector<1x32xf32> to vector<16x32xf32>
    %266 = arith.addf %262, %265 : vector<16x32xf32>
    %267 = arith.addf %250, %266 : vector<16x32xf32>
    %cst_142 = arith.constant dense<0.000000e+00> : vector<16xf32>
    %268 = vector.multi_reduction <add>, %267, %cst_142 [1] : vector<16x32xf32> to vector<16xf32>
    %269 = vector.shape_cast %268 : vector<16xf32> to vector<16x1xf32>
    %cst_143 = arith.constant 3.200000e+01 : f32
    %270 = vector.broadcast %cst_143 : f32 to vector<16x1xf32>
    %271 = arith.divf %269, %270 : vector<16x1xf32>
    %272 = arith.mulf %267, %267 : vector<16x32xf32>
    %cst_144 = arith.constant dense<0.000000e+00> : vector<16xf32>
    %273 = vector.multi_reduction <add>, %272, %cst_144 [1] : vector<16x32xf32> to vector<16xf32>
    %274 = vector.shape_cast %273 : vector<16xf32> to vector<16x1xf32>
    %cst_145 = arith.constant 3.200000e+01 : f32
    %275 = vector.broadcast %cst_145 : f32 to vector<16x1xf32>
    %276 = arith.divf %274, %275 : vector<16x1xf32>
    %277 = arith.mulf %271, %271 : vector<16x1xf32>
    %278 = arith.subf %276, %277 : vector<16x1xf32>
    %279 = vector.broadcast %271 : vector<16x1xf32> to vector<16x32xf32>
    %280 = arith.subf %267, %279 : vector<16x32xf32>
    %cst_146 = arith.constant 9.99999974E-6 : f32
    %281 = vector.broadcast %cst_146 : f32 to vector<16x1xf32>
    %282 = arith.addf %278, %281 : vector<16x1xf32>
    %283 = math.rsqrt %282 : vector<16x1xf32>
    %284 = vector.broadcast %283 : vector<16x1xf32> to vector<16x32xf32>
    %285 = arith.mulf %280, %284 : vector<16x32xf32>
    %c0_147 = arith.constant 0 : index
    %c0_148 = arith.constant 0 : index
    %c0_149 = arith.constant 0 : index
    %286 = vector.load %arg19[%c0_147, %c0_148, %c0_149] : memref<1x1x32xf32, #tpu.memory_space<vmem>>, vector<1x1x32xf32>
    %287 = vector.shape_cast %286 : vector<1x1x32xf32> to vector<1x32xf32>
    %288 = vector.broadcast %287 : vector<1x32xf32> to vector<16x32xf32>
    %289 = arith.mulf %285, %288 : vector<16x32xf32>
    %c0_150 = arith.constant 0 : index
    %c0_151 = arith.constant 0 : index
    %c0_152 = arith.constant 0 : index
    %290 = vector.load %arg20[%c0_150, %c0_151, %c0_152] : memref<1x1x32xf32, #tpu.memory_space<vmem>>, vector<1x1x32xf32>
    %291 = vector.shape_cast %290 : vector<1x1x32xf32> to vector<1x32xf32>
    %292 = vector.broadcast %291 : vector<1x32xf32> to vector<16x32xf32>
    %293 = arith.addf %289, %292 : vector<16x32xf32>
    %c0_153 = arith.constant 0 : index
    %c0_154 = arith.constant 0 : index
    %294 = vector.load %arg25[%c0_153, %c0_154] : memref<16x32xf32, #tpu.memory_space<vmem>>, vector<16x32xf32>
    tpu.vector_store %arg25[%c0_153, %c0_154], %293 {strides = array<i32>} : memref<16x32xf32, #tpu.memory_space<vmem>>, vector<16x32xf32>,
    return
  }
  func.func @transform_0(%arg0: i32) -> (i32, i32) {
    %c0_i32 = arith.constant 0 : i32
    %c0_i32_0 = arith.constant 0 : i32
    %c0_i32_1 = arith.constant 0 : i32
    return %c0_i32, %c0_i32_0 : i32, i32
  }
  func.func @transform_1(%arg0: i32) -> (i32, i32) {
    %c0_i32 = arith.constant 0 : i32
    %c0_i32_0 = arith.constant 0 : i32
    %c0_i32_1 = arith.constant 0 : i32
    return %c0_i32, %c0_i32_0 : i32, i32
  }
  func.func @transform_2(%arg0: i32) -> (i32, i32, i32) {
    %c0_i32 = arith.constant 0 : i32
    %c0_i32_0 = arith.constant 0 : i32
    %c0_i32_1 = arith.constant 0 : i32
    %c0_i32_2 = arith.constant 0 : i32
    return %c0_i32, %c0_i32_0, %c0_i32_1 : i32, i32, i32
  }
  func.func @transform_3(%arg0: i32) -> (i32, i32, i32) {
    %c0_i32 = arith.constant 0 : i32
    %c0_i32_0 = arith.constant 0 : i32
    %c0_i32_1 = arith.constant 0 : i32
    %c0_i32_2 = arith.constant 0 : i32
    return %c0_i32, %c0_i32_0, %c0_i32_1 : i32, i32, i32
  }
  func.func @transform_4(%arg0: i32) -> (i32, i32, i32) {
    %c0_i32 = arith.constant 0 : i32
    %c0_i32_0 = arith.constant 0 : i32
    %c0_i32_1 = arith.constant 0 : i32
    return %arg0, %c0_i32, %c0_i32_0 : i32, i32, i32
  }
  func.func @transform_5(%arg0: i32) -> (i32, i32, i32) {
    %c0_i32 = arith.constant 0 : i32
    %c0_i32_0 = arith.constant 0 : i32
    %c0_i32_1 = arith.constant 0 : i32
    return %arg0, %c0_i32, %c0_i32_0 : i32, i32, i32
  }
  func.func @transform_6(%arg0: i32) -> (i32, i32, i32) {
    %c0_i32 = arith.constant 0 : i32
    %c0_i32_0 = arith.constant 0 : i32
    %c0_i32_1 = arith.constant 0 : i32
    return %arg0, %c0_i32, %c0_i32_0 : i32, i32, i32
  }
  func.func @transform_7(%arg0: i32) -> (i32, i32, i32) {
    %c0_i32 = arith.constant 0 : i32
    %c0_i32_0 = arith.constant 0 : i32
    %c0_i32_1 = arith.constant 0 : i32
    return %arg0, %c0_i32, %c0_i32_0 : i32, i32, i32
  }
  func.func @transform_8(%arg0: i32) -> (i32, i32, i32) {
    %c0_i32 = arith.constant 0 : i32
    %c0_i32_0 = arith.constant 0 : i32
    %c0_i32_1 = arith.constant 0 : i32
    return %arg0, %c0_i32, %c0_i32_0 : i32, i32, i32
  }
  func.func @transform_9(%arg0: i32) -> (i32, i32, i32) {
    %c0_i32 = arith.constant 0 : i32
    %c0_i32_0 = arith.constant 0 : i32
    %c0_i32_1 = arith.constant 0 : i32
    return %arg0, %c0_i32, %c0_i32_0 : i32, i32, i32
  }
  func.func @transform_10(%arg0: i32) -> (i32, i32, i32) {
    %c0_i32 = arith.constant 0 : i32
    %c0_i32_0 = arith.constant 0 : i32
    %c0_i32_1 = arith.constant 0 : i32
    return %arg0, %c0_i32, %c0_i32_0 : i32, i32, i32
  }
  func.func @transform_11(%arg0: i32) -> (i32, i32, i32) {
    %c0_i32 = arith.constant 0 : i32
    %c0_i32_0 = arith.constant 0 : i32
    %c0_i32_1 = arith.constant 0 : i32
    return %arg0, %c0_i32, %c0_i32_0 : i32, i32, i32
  }
  func.func @transform_12(%arg0: i32) -> (i32, i32, i32) {
    %c0_i32 = arith.constant 0 : i32
    %c0_i32_0 = arith.constant 0 : i32
    %c0_i32_1 = arith.constant 0 : i32
    return %arg0, %c0_i32, %c0_i32_0 : i32, i32, i32
  }
  func.func @transform_13(%arg0: i32) -> (i32, i32, i32) {
    %c0_i32 = arith.constant 0 : i32
    %c0_i32_0 = arith.constant 0 : i32
    %c0_i32_1 = arith.constant 0 : i32
    return %arg0, %c0_i32, %c0_i32_0 : i32, i32, i32
  }
  func.func @transform_14(%arg0: i32) -> (i32, i32, i32) {
    %c0_i32 = arith.constant 0 : i32
    %c0_i32_0 = arith.constant 0 : i32
    %c0_i32_1 = arith.constant 0 : i32
    return %arg0, %c0_i32, %c0_i32_0 : i32, i32, i32
  }
  func.func @transform_15(%arg0: i32) -> (i32, i32, i32) {
    %c0_i32 = arith.constant 0 : i32
    %c0_i32_0 = arith.constant 0 : i32
    %c0_i32_1 = arith.constant 0 : i32
    return %arg0, %c0_i32, %c0_i32_0 : i32, i32, i32
  }
  func.func @transform_16(%arg0: i32) -> (i32, i32, i32) {
    %c0_i32 = arith.constant 0 : i32
    %c0_i32_0 = arith.constant 0 : i32
    %c0_i32_1 = arith.constant 0 : i32
    return %arg0, %c0_i32, %c0_i32_0 : i32, i32, i32
  }
  func.func @transform_17(%arg0: i32) -> (i32, i32, i32) {
    %c0_i32 = arith.constant 0 : i32
    %c0_i32_0 = arith.constant 0 : i32
    %c0_i32_1 = arith.constant 0 : i32
    return %arg0, %c0_i32, %c0_i32_0 : i32, i32, i32
  }
  func.func @transform_18(%arg0: i32) -> (i32, i32, i32) {
    %c0_i32 = arith.constant 0 : i32
    %c0_i32_0 = arith.constant 0 : i32
    %c0_i32_1 = arith.constant 0 : i32
    return %arg0, %c0_i32, %c0_i32_0 : i32, i32, i32
  }
  func.func @transform_19(%arg0: i32) -> (i32, i32, i32) {
    %c0_i32 = arith.constant 0 : i32
    %c0_i32_0 = arith.constant 0 : i32
    %c0_i32_1 = arith.constant 0 : i32
    return %arg0, %c0_i32, %c0_i32_0 : i32, i32, i32
  }
  func.func @transform_20(%arg0: i32) -> (i32, i32, i32) {
    %c0_i32 = arith.constant 0 : i32
    %c0_i32_0 = arith.constant 0 : i32
    %c0_i32_1 = arith.constant 0 : i32
    return %arg0, %c0_i32, %c0_i32_0 : i32, i32, i32
  }
  func.func @transform_21(%arg0: i32) -> (i32, i32, i32) {
    %c0_i32 = arith.constant 0 : i32
    %c0_i32_0 = arith.constant 0 : i32
    %c0_i32_1 = arith.constant 0 : i32
    return %arg0, %c0_i32, %c0_i32_0 : i32, i32, i32
  }
  func.func @transform_22(%arg0: i32) -> (i32, i32, i32) {
    %c0_i32 = arith.constant 0 : i32
    %c0_i32_0 = arith.constant 0 : i32
    %c0_i32_1 = arith.constant 0 : i32
    return %arg0, %c0_i32, %c0_i32_0 : i32, i32, i32
  }
  func.func @transform_23(%arg0: i32) -> (i32, i32, i32) {
    %c0_i32 = arith.constant 0 : i32
    %c0_i32_0 = arith.constant 0 : i32
    %c0_i32_1 = arith.constant 0 : i32
    return %arg0, %c0_i32, %c0_i32_0 : i32, i32, i32
  }
  func.func @transform_24(%arg0: i32) -> (i32, i32) {
    %c0_i32 = arith.constant 0 : i32
    %c0_i32_0 = arith.constant 0 : i32
    %c0_i32_1 = arith.constant 0 : i32
    return %c0_i32, %c0_i32_0 : i32, i32
  }
}

</mosaic_0001>

<bundles_post_ra>
// kernel: tpu_custom_call.1
= control target key start
LH: loop header
LB: loop body
LE: loop exit
PB: predicated region body
PF: predicated region fallthrough
CT: control target
= control target key end

     0   :  { %s4687_s0 = inlined_call_operand.hbm [shape: f32[16,32], index: 0, kind: input, shape index: {}]   ;;  %s4688_s1 = inlined_call_operand.hbm [shape: f32[16,32], index: 1, kind: input, shape index: {}]   ;;  %s4689_s2 = inlined_call_operand.hbm [shape: f32[2,8,8], index: 2, kind: input, shape index: {}]   ;;  %s4690_s3 = inlined_call_operand.hbm [shape: f32[2,8,8], index: 3, kind: input, shape index: {}]   ;;  %s4691_s4 = inlined_call_operand.vmem [shape: f32[2,32,96], index: 4, kind: input, shape index: {}]   ;;  %s4692_s5 = inlined_call_operand.vmem [shape: f32[2,1,96], index: 5, kind: input, shape index: {}]   ;;  %s4693_s6 = inlined_call_operand.vmem [shape: f32[2,32,32], index: 6, kind: input, shape index: {}]   ;;  %s4694_s7 = inlined_call_operand.vmem [shape: f32[2,1,32], index: 7, kind: input, shape index: {}]   ;;  %s4695_s8 = inlined_call_operand.vmem [shape: f32[2,32,32], index: 8, kind: input, shape index: {}]   ;;  %s4696_s9 = inlined_call_operand.vmem [shape: f32[2,1,32], index: 9, kind: input, shape index: {}]   ;;  %s4697_s10 = inlined_call_operand.hbm [shape: f32[2,32,64], index: 10, kind: input, shape index: {}]   ;;  %s4698_s11 = inlined_call_operand.vmem [shape: f32[2,1,64], index: 11, kind: input, shape index: {}]   ;;  %s4699_s12 = inlined_call_operand.hbm [shape: f32[2,32,32], index: 12, kind: input, shape index: {}]   ;;  %s4700_s13 = inlined_call_operand.vmem [shape: f32[2,1,32], index: 13, kind: input, shape index: {}]   ;;  %s4701_s14 = inlined_call_operand.hbm [shape: f32[2,1,32], index: 14, kind: input, shape index: {}]   ;;  %s4702_s15 = inlined_call_operand.vmem [shape: f32[2,1,32], index: 15, kind: input, shape index: {}]   ;;  %s4703_s16 = inlined_call_operand.vmem [shape: f32[2,1,32], index: 16, kind: input, shape index: {}]   ;;  %s4704_s17 = inlined_call_operand.hbm [shape: f32[2,1,32], index: 17, kind: input, shape index: {}]   ;;  %s4705_s18 = inlined_call_operand.vmem [shape: f32[2,1,32], index: 18, kind: input, shape index: {}]   ;;  %s4706_s19 = inlined_call_operand.hbm [shape: f32[2,1,32], index: 19, kind: input, shape index: {}]   ;;  %s4707_s20 = inlined_call_operand.hbm [shape: f32[2,32,64], index: 20, kind: input, shape index: {}]   ;;  %s4708_s21 = inlined_call_operand.vmem [shape: f32[2,1,64], index: 21, kind: input, shape index: {}]   ;;  %s4709_s22 = inlined_call_operand.vmem [shape: f32[2,64,32], index: 22, kind: input, shape index: {}]   ;;  %s4710_s23 = inlined_call_operand.vmem [shape: f32[2,1,32], index: 23, kind: input, shape index: {}]   ;;  %s4711_s24 = inlined_call_operand.hbm [shape: f32[16,32], index: 24, kind: output, shape index: {}]  }
   0x1   :  { %4719 = sst [smem:[#allocation26_spill]] %s4687_s0 }
   0x2   :  { %4720 = sst [smem:[#allocation27_spill]] %s4688_s1 }
   0x3   :  { %4721 = sst [smem:[#allocation28_spill]] %s4689_s2 }
   0x4   :  { %4722 = sst [smem:[#allocation29_spill]] %s4690_s3 }
   0x5   :  { %4723 = sst [smem:[#allocation30_spill]] %s4691_s4 }
   0x6   :  { %4724 = sst [smem:[#allocation31_spill]] %s4692_s5 }
   0x7   :  { %4725 = sst [smem:[#allocation32_spill]] %s4693_s6 }
   0x8   :  { %4726 = sst [smem:[#allocation33_spill]] %s4694_s7 }
   0x9   :  { %4727 = sst [smem:[#allocation34_spill]] %s4695_s8 }
   0xa   :  { %4728 = sst [smem:[#allocation35_spill]] %s4696_s9 }
   0xb   :  { %4729 = sst [smem:[#allocation36_spill]] %s4697_s10 }
   0xc   :  { %4730 = sst [smem:[#allocation37_spill]] %s4698_s11 }
   0xd   :  { %4731 = sst [smem:[#allocation38_spill]] %s4699_s12 }
   0xe   :  { %4732 = sst [smem:[#allocation39_spill]] %s4700_s13 }
   0xf   :  { %4733 = sst [smem:[#allocation40_spill]] %s4701_s14 }
  0x10   :  { %4734 = sst [smem:[#allocation41_spill]] %s4702_s15 }
  0x11   :  { %4735 = sst [smem:[#allocation42_spill]] %s4703_s16 }
  0x12   :  { %4736 = sst [smem:[#allocation43_spill]] %s4704_s17 }
  0x13   :  { %4737 = sst [smem:[#allocation44_spill]] %s4705_s18 }
  0x14   :  { %4738 = sst [smem:[#allocation45_spill]] %s4706_s19 }
  0x15   :  { %4739 = sst [smem:[#allocation46_spill]] %s4707_s20 }
  0x16   :  { %4740 = sst [smem:[#allocation47_spill]] %s4708_s21 }
  0x17   :  { %4741 = sst [smem:[#allocation48_spill]] %s4709_s22 }
  0x18   :  { %4742 = sst [smem:[#allocation49_spill]] %s4710_s23 }
  0x19   :  { %4743 = sst [smem:[#allocation50_spill]] %s4711_s24 }
  0x1a   :  { %29 = vsyncpa [#allocation4], 0 }
  0x1b   :  { %30 = vsyncpa [#allocation7], 0 }
  0x1c   :  { %31 = vsyncpa [#allocation10], 0 }
  0x1d   :  { %32 = vsyncpa [#allocation5], 0  ;;  %s3990_s5 = smov 0   ;;  %s3992_s26 = smov 0  }
  0x1e   :  { %s3994_s27 = smov 0   ;;  %s3996_s28 = smov 0  }
  0x1f LB: > { %4744 = sst [smem:[#allocation23_spill]] %s3836_s27  ;;  %s4009_s6 = sadd.s32 4294967295, %s3840_s28   ;;  %s3840_s28 = sphi %s3996_s28, %s4795_s28   ;;  %s3836_s27 = sphi %s3994_s27, %s4797_s27   ;;  %s3832_s26 = sphi %s3992_s26, %s4799_s26   ;;  %s3828_s5 = sphi %s3990_s5, %s4798_s5  }
  0x20   : > { %s4012_s2 = sadd.s32 1, %s3840_s28   ;;  %s285_s0 = sadd.s32 1, %s3836_s27 }
  0x21   : > { %4745 = sst [smem:[#allocation24_spill]] %s4012_s2  ;;  %s282_s29 = ssub.s32 %s3840_s28, %s4012_s2 }
  0x22   : > { %p283_p0 = scmp.eq.s32.totalorder %s282_s29, 0  ;;  %p292_p1 = scmp.ne.s32.totalorder %s3836_s27, %s3832_s26 }
  0x23   : > { %p293_p2 = scmp.eq.s32.totalorder %s3840_s28, 0  ;;  %p298_p3 = scmp.ne.s32.totalorder %s3832_s26, %s3828_s5 }
  0x24   : > { %s4022_s7 = scalar_select %p283_p0, %s3836_s27, %s285_s0  }
  0x25   : > { %p4024_p4 = por %p293_p2, %p292_p1  ;;  %p299_p5 = scmp.eq.s32.totalorder %s4009_s6, 0 }
  0x26   : > { %4746 = sst [smem:[#allocation25_spill]] %s4022_s7  ;;  %p3121_p6 = scmp.ge.s32.totalorder %s3840_s28, 1 }
  0x27   : > { %p668_p7 = scmp.lt.s32.totalorder %s3840_s28, 3  ;;  %p4033_p8 = por %p299_p5, %p298_p3 }
  0x28   : > { %p3122_p9 = scmp.ne.s32.totalorder %s4009_s6, 0  ;;  %s4750_s1 = sld [smem:[#allocation26_spill]] }
  0x29   : > { %p4038_p10 = pnand %p3121_p6, %p668_p7  ;;  %s3842_s29 = smov [#allocation3]  }
  0x2a   : > { %s681_s0 = sshll.u32 %s3842_s29, 4  ;;  %p3294_p13 = scmp.lt.s32.totalorder %s3840_s28, 2  ;;  %s682_s0 = int_to_ptr.vmem [resolvable:$true] %s681_s0 }
  0x2b   : > { %p3258_p11 = pneg %p4038_p10  ;;  %s779_s2 = sand.u32 1, %s3840_s28  }
  0x2c   : > { %s4714_s24 = smov 128   ;;  %s4716_s8 = smov 8  }
  0x2d   : > { %p4049_p12 = pnand %p3258_p11, %p299_p5  ;;  %s4061_s4 = sand.u32 1, %s3836_s27  }
  0x2e   : > { %s679_s5 = sshll.u32 %s4750_s1, 4  ;;  %s4064_s1 = sshll.u32 %s4061_s4, 5  ;;  %s680_s5 = int_to_ptr.hbm [resolvable:$true] %s679_s5 }
  0x2f   : > { %3261 = dma.hbm_to_vmem [thread:$0]  (!%p4049_p12), %s680_s5, 256, %s682_s0, [#allocation4], %s4714_s24, %s4714_s24, %s4716_s8  }
  0x30   : > { %s4067_s29 = sshll.u32 %s3840_s28, 5  ;;  %s4752_s10 = sld [smem:[#allocation36_spill]] }
  0x31   : > { %s783_s16 = scalar_lea.vmem [#allocation11], %s4064_s1  ;;  %p4081_p0 = pnand %p3294_p13, %p4024_p4 }
  0x32   : > { %s791_s5 = sshll.u32 %s783_s16, 4  ;;  %s4754_s12 = sld [smem:[#allocation38_spill]]  ;;  %s792_s5 = int_to_ptr.vmem [resolvable:$true] %s791_s5 }
  0x33   : > { %s811_s23 = scalar_lea.vmem [#allocation12], %s4064_s1  ;;  %s4094_s15 = scalar_lea.sflag [#allocation4], %s779_s2 }
  0x34   : > { %s4090_s27 = sshll.u32 %s811_s23, 4  ;;  %p4098_p2 = pneg %p4081_p0  ;;  %s820_s27 = int_to_ptr.vmem [resolvable:$true] %s4090_s27 }
  0x36   : > { %s788_s21 = scalar_lea.hbm %s4752_s10, %s4067_s29 }
  0x37   : > { %s4073_s18 = sshll.u32 %s788_s21, 4  ;;  %s790_s18 = int_to_ptr.hbm [resolvable:$true] %s4073_s18 }
  0x38   : > { %s816_s22 = scalar_lea.hbm %s4754_s12, %s4067_s29  ;;  %s3492_s16 = sshra.s32 %s790_s18, 4  ;;  %s3493_s16 = int_to_ptr.hbm [resolvable:$true] %s3492_s16 }
  0x39   : > { %s4092_s21 = sshll.u32 %s816_s22, 4  ;;  %s3494_s30 = scalar_lea.hbm %s3493_s16, 32  ;;  %s818_s21 = int_to_ptr.hbm [resolvable:$true] %s4092_s21 }
  0x3a   : > { %p3495_p1 = scmp.ne.s32.totalorder %s3493_s16, %s3494_s30  ;;  %s3499_s22 = scalar_lea.hbm %s4752_s10, 64 }
  0x3b   : > { %p3500_p6 = scmp.lt.s32.totalorder %s3493_s16, %s4752_s10  ;;  %p3501_p7 = scmp.lt.s32.totalorder %s3499_s22, %s3494_s30 }
  0x3c   : > { %p3497_p3 = pnand %p4098_p2, %p3495_p1 }
  0x3d   : > { %p3502_p11 = por %p3501_p7, %p3500_p6 }
  0x3e   : > { %p3498_p4 = pneg %p3497_p3 }
  0x40   : > { %p3503_p13 = pnand %p3502_p11, %p3498_p4 }
  0x42   : > { %3506 = shalt.err (!%p3503_p13)
}
  0x43   : > { %s4756_s11 = smov 8   ;;  %s4757_s9 = smov 128  }
  0x44   : > { %3274 = dma.hbm_to_vmem [thread:$0]  (!%p4081_p0), %s790_s18, 512, %s792_s5, %s4094_s15, %s4757_s9, %s4757_s9, %s4756_s11  }
  0x45   : > { %s3522_s24 = sshra.s32 %s818_s21, 4  ;;  %s3529_s22 = scalar_lea.hbm %s4754_s12, 64  ;;  %s3523_s24 = int_to_ptr.hbm [resolvable:$true] %s3522_s24 }
  0x46   : > { %s3524_s8 = scalar_lea.hbm %s3523_s24, 32  ;;  %p3530_p6 = scmp.lt.s32.totalorder %s3523_s24, %s4754_s12 }
  0x47   : > { %p3525_p1 = scmp.ne.s32.totalorder %s3523_s24, %s3524_s8  ;;  %p3531_p7 = scmp.lt.s32.totalorder %s3529_s22, %s3524_s8 }
  0x49   : > { %p3527_p3 = pnand %p3525_p1, %p4098_p2  ;;  %p3532_p11 = por %p3531_p7, %p3530_p6 }
  0x4b   : > { %p3528_p4 = pneg %p3527_p3 }
  0x4d   : > { %p3533_p13 = pnand %p3532_p11, %p3528_p4 }
  0x4f   : > { %3536 = shalt.err (!%p3533_p13)
}
  0x50   : > { %3277 = dma.hbm_to_vmem [thread:$0]  (!%p4081_p0), %s818_s21, 512, %s820_s27, %s4094_s15, %s4757_s9, %s4757_s9, %s4756_s11  }
  0x51   : > { %s4758_s14 = sld [smem:[#allocation40_spill]]  ;;  %s838_s24 = scalar_lea.vmem [#allocation13], %s4061_s4 }
  0x52   : > { %s845_s8 = sshll.u32 %s838_s24, 4  ;;  %s846_s8 = int_to_ptr.vmem [resolvable:$true] %s845_s8 }
  0x57   : > { %s841_s16 = scalar_lea.hbm %s4758_s14, %s3840_s28  ;;  %s3559_s27 = scalar_lea.hbm %s4758_s14, 2 }
  0x58   : > { %s843_s30 = sshll.u32 %s841_s16, 4  ;;  %s844_s30 = int_to_ptr.hbm [resolvable:$true] %s843_s30 }
  0x59   : > { %s3552_s22 = sshra.s32 %s844_s30, 4  ;;  %s3553_s22 = int_to_ptr.hbm [resolvable:$true] %s3552_s22 }
  0x5a   : > { %s3554_s23 = scalar_lea.hbm %s3553_s22, 1  ;;  %p3560_p6 = scmp.lt.s32.totalorder %s3553_s22, %s4758_s14 }
  0x5b   : > { %p3555_p1 = scmp.ne.s32.totalorder %s3553_s22, %s3554_s23  ;;  %p3561_p7 = scmp.lt.s32.totalorder %s3559_s27, %s3554_s23 }
  0x5d   : > { %p3557_p3 = pnand %p3555_p1, %p4098_p2  ;;  %p3562_p11 = por %p3561_p7, %p3560_p6 }
  0x5f   : > { %p3558_p4 = pneg %p3557_p3 }
  0x61   : > { %p3563_p13 = pnand %p3562_p11, %p3558_p4 }
  0x63   : > { %3566 = shalt.err (!%p3563_p13)
}
  0x64   : > { %3280 = dma.hbm_to_vmem [thread:$0]  (!%p4081_p0), %s844_s30, 16, %s846_s8, %s4094_s15  }
  0x65   : > { %s4759_s17 = sld [smem:[#allocation43_spill]]  ;;  %s867_s24 = scalar_lea.vmem [#allocation14], %s4061_s4 }
  0x66   : > { %s874_s2 = sshll.u32 %s867_s24, 4  ;;  %s875_s2 = int_to_ptr.vmem [resolvable:$true] %s874_s2 }
  0x6b   : > { %s870_s10 = scalar_lea.hbm %s4759_s17, %s3840_s28  ;;  %s3589_s30 = scalar_lea.hbm %s4759_s17, 2 }
  0x6c   : > { %s872_s16 = sshll.u32 %s870_s10, 4  ;;  %s873_s16 = int_to_ptr.hbm [resolvable:$true] %s872_s16 }
  0x6d   : > { %s3582_s12 = sshra.s32 %s873_s16, 4  ;;  %s3583_s12 = int_to_ptr.hbm [resolvable:$true] %s3582_s12 }
  0x6e   : > { %s3584_s22 = scalar_lea.hbm %s3583_s12, 1  ;;  %p3590_p6 = scmp.lt.s32.totalorder %s3583_s12, %s4759_s17 }
  0x6f   : > { %p3585_p1 = scmp.ne.s32.totalorder %s3583_s12, %s3584_s22  ;;  %p3591_p7 = scmp.lt.s32.totalorder %s3589_s30, %s3584_s22 }
  0x71   : > { %p3587_p3 = pnand %p3585_p1, %p4098_p2  ;;  %p3592_p11 = por %p3591_p7, %p3590_p6 }
  0x73   : > { %p3588_p4 = pneg %p3587_p3 }
  0x75   : > { %p3593_p13 = pnand %p3592_p11, %p3588_p4 }
  0x77   : > { %3596 = shalt.err (!%p3593_p13)
}
  0x78   : > { %3283 = dma.hbm_to_vmem [thread:$0]  (!%p4081_p0), %s873_s16, 16, %s875_s2, %s4094_s15  }
  0x79   : > { %s4760_s10 = sld [smem:[#allocation27_spill]]  ;;  %s3845_s23 = smov [#allocation6]  }
  0x7a   : > { %s695_s27 = sshll.u32 %s3845_s23, 4  ;;  %s4761_s19 = sld [smem:[#allocation45_spill]]  ;;  %s696_s27 = int_to_ptr.vmem [resolvable:$true] %s695_s27 }
  0x7b   : > { %s890_s8 = scalar_lea.vmem [#allocation15], %s4061_s4  ;;  %s4762_s5 = sld [smem:[#allocation28_spill]] }
  0x7c   : > { %s897_s16 = sshll.u32 %s890_s8, 4  ;;  %s898_s16 = int_to_ptr.vmem [resolvable:$true] %s897_s16 }
  0x7f   : > { %s693_s24 = sshll.u32 %s4760_s10, 4  ;;  %s694_s24 = int_to_ptr.hbm [resolvable:$true] %s693_s24 }
  0x80   : > { %3264 = dma.hbm_to_vmem [thread:$0]  (!%p4049_p12), %s694_s24, 256, %s696_s27, [#allocation7], %s4757_s9, %s4757_s9, %s4756_s11  }
  0x81   : > { %s893_s30 = scalar_lea.hbm %s4761_s19, %s3840_s28  ;;  %s707_s10 = sshll.u32 %s4762_s5, 4  ;;  %s708_s10 = int_to_ptr.hbm [resolvable:$true] %s707_s10 }
  0x82   : > { %s895_s2 = sshll.u32 %s893_s30, 4  ;;  %s3649_s28 = scalar_lea.hbm %s4761_s19, 2  ;;  %s896_s2 = int_to_ptr.hbm [resolvable:$true] %s895_s2 }
  0x83   : > { %s3642_s23 = sshra.s32 %s896_s2, 4  ;;  %s3643_s23 = int_to_ptr.hbm [resolvable:$true] %s3642_s23 }
  0x84   : > { %s3644_s14 = scalar_lea.hbm %s3643_s23, 1  ;;  %p3650_p6 = scmp.lt.s32.totalorder %s3643_s23, %s4761_s19 }
  0x85   : > { %p3645_p1 = scmp.ne.s32.totalorder %s3643_s23, %s3644_s14  ;;  %p3651_p7 = scmp.lt.s32.totalorder %s3649_s28, %s3644_s14 }
  0x87   : > { %p3647_p3 = pnand %p3645_p1, %p4098_p2  ;;  %p3652_p11 = por %p3651_p7, %p3650_p6 }
  0x89   : > { %p3648_p4 = pneg %p3647_p3 }
  0x8b   : > { %p3653_p13 = pnand %p3652_p11, %p3648_p4 }
  0x8d   : > { %3656 = shalt.err (!%p3653_p13)
}
  0x8e   : > { %3286 = dma.hbm_to_vmem [thread:$0]  (!%p4081_p0), %s896_s2, 16, %s898_s16, %s4094_s15  }
  0x8f   : > { %s3846_s22 = smov [#allocation8]   ;;  %s4763_s18 = sld [smem:[#allocation29_spill]] }
  0x90   : > { %s709_s30 = sshll.u32 %s3846_s22, 4  ;;  %s3847_s14 = smov [#allocation9]   ;;  %s710_s30 = int_to_ptr.vmem [resolvable:$true] %s709_s30 }
  0x91   : > { %3267 = dma.hbm_to_vmem [thread:$0]  (!%p4049_p12), %s708_s10, 256, %s710_s30, [#allocation7], %s4757_s9, %s4757_s9, %s4756_s11  }
  0x92   : > { %s723_s23 = sshll.u32 %s3847_s14, 4  ;;  %s4764_s20 = sld [smem:[#allocation46_spill]]  ;;  %s724_s23 = int_to_ptr.vmem [resolvable:$true] %s723_s23 }
  0x93   : > { %s908_s28 = scalar_lea.vmem [#allocation16], %s4064_s1 }
  0x94   : > { %s916_s4 = sshll.u32 %s908_s28, 4  ;;  %s917_s4 = int_to_ptr.vmem [resolvable:$true] %s916_s4 }
  0x95   : > { %s721_s5 = sshll.u32 %s4763_s18, 4  ;;  %s722_s5 = int_to_ptr.hbm [resolvable:$true] %s721_s5 }
  0x96   : > { %3270 = dma.hbm_to_vmem [thread:$0]  (!%p4049_p12), %s722_s5, 256, %s724_s23, [#allocation10], %s4757_s9, %s4757_s9, %s4756_s11  }
  0x98   : > { %s913_s16 = scalar_lea.hbm %s4764_s20, %s4067_s29  ;;  %s3739_s30 = scalar_lea.hbm %s4764_s20, 64 }
  0x99   : > { %s914_s2 = sshll.u32 %s913_s16, 4  ;;  %s915_s2 = int_to_ptr.hbm [resolvable:$true] %s914_s2 }
  0x9a   : > { %s3732_s12 = sshra.s32 %s915_s2, 4  ;;  %s3733_s12 = int_to_ptr.hbm [resolvable:$true] %s3732_s12 }
  0x9b   : > { %s3734_s10 = scalar_lea.hbm %s3733_s12, 32  ;;  %p3740_p6 = scmp.lt.s32.totalorder %s3733_s12, %s4764_s20 }
  0x9c   : > { %p3735_p1 = scmp.ne.s32.totalorder %s3733_s12, %s3734_s10  ;;  %p3741_p12 = scmp.lt.s32.totalorder %s3739_s30, %s3734_s10 }
  0x9e   : > { %p3737_p3 = pnand %p3735_p1, %p4098_p2  ;;  %p3742_p7 = por %p3741_p12, %p3740_p6 }
  0xa0   : > { %p3738_p4 = pneg %p3737_p3 }
  0xa2   : > { %p3743_p11 = pnand %p3742_p7, %p3738_p4 }
  0xa4   : > { %3746 = shalt.err (!%p3743_p11)
}
  0xa5   : > { %3289 = dma.hbm_to_vmem [thread:$0]  (!%p4081_p0), %s915_s2, 512, %s917_s4, %s4094_s15, %s4757_s9, %s4757_s9, %s4756_s11  }
  0xa6   : > { %948 = sbr.rel (%p4038_p10) target bundleno = 3091 (0xc13), region = 116 }
  0xab   : > { %3807 = dma.done.wait (%p299_p5), [#allocation4], 256  }
  0xac   : > { %3809 = vsyncadd (%p299_p5), [#allocation4], 4294967040 }
  0xad   : > { %3811 = dma.done.wait (%p299_p5), [#allocation7], 512  }
  0xae   : > { %3813 = vsyncadd (%p299_p5), [#allocation7], 4294966784 }
  0xaf   : > { %3815 = dma.done.wait (%p299_p5), [#allocation10], 256  }
  0xb0   : > { %3817 = vsyncadd (%p299_p5), [#allocation10], 4294967040  ;;  %s970_s9 = sand.u32 1, %s4009_s6   ;;  %s4239_s11 = sand.u32 1, %s3832_s26  }
  0xb1   : > { %s3141_s13 = sshll.u32 %s4239_s11, 5  ;;  %s971_s15 = scalar_lea.sflag [#allocation4], %s970_s9 }
  0xb2   : > { %s4242_s25 = scalar_lea.vmem [#allocation11], %s3141_s13 }
  0xb3   : > { %3819 = dma.done.wait (%p4033_p8), %s971_s15, 1584  }
  0xb4   : > { %3821 = vsyncadd (%p4033_p8), %s971_s15, 4294965712  ;;  %p1154_p10 = scmp.lt.s32.totalorder %s4009_s6, 1  ;;  %s4766_s24 = sld [smem:[#allocation30_spill]] }
  0xb5   : > { %s4767_s28 = sld [smem:[#allocation32_spill]]  ;;  %s4312_s19 = scalar_lea.vmem [#allocation12], %s3141_s13 }
  0xb6   : > { %s4250_s1 = scalar_select %p1154_p10, %s4009_s6, 1 }
  0xb7   : > { %s4769_s8 = sld [smem:[#allocation34_spill]]  ;;  %s993_s30 = scalar_lea.vmem [#allocation13], %s4239_s11 }
  0xb8   : > { %s3222_s0 = sshll.u32 %s4250_s1, 5  ;;  %s4773_s22 = sld [smem:[#allocation41_spill]] }
  0xb9   : > { %s4775_s15 = sld [smem:[#allocation44_spill]]  ;;  %s1011_s20 = scalar_lea.vmem [#allocation15], %s4239_s11 }
  0xba   : > { %s1158_s27 = scalar_lea.vmem %s4766_s24, %s3222_s0  ;;  %s4776_s14 = sld [smem:[#allocation47_spill]] }
  0xbb   : > { %s4263_s4 = scalar_lea.vmem %s4767_s28, %s3222_s0  ;;  %s3225_s24 = sshll.u32 %s4250_s1, 6 }
  0xbc   : > { %s4777_s5 = sld [smem:[#allocation48_spill]] }
  0xbd   : > { %s4272_s9 = scalar_lea.vmem %s4769_s8, %s3222_s0  ;;  %s4774_s0 = sld [smem:[#allocation42_spill]] }
  0xbe   : > { %s1186_s29 = scalar_lea.vmem %s4773_s22, %s4250_s1  ;;  %s4778_s22 = sld [smem:[#allocation49_spill]] }
  0xbf   : > { %s1192_s3 = scalar_lea.vmem %s4775_s15, %s4250_s1  ;;  %s4317_s8 = scalar_lea.vmem [#allocation16], %s3141_s13 }
  0xc0   : > { %s1195_s23 = scalar_lea.vmem %s4776_s14, %s4250_s1  ;;  %1207 = sbr.rel (%p3122_p9) target bundleno = 200 (0xc8), region = 160 }
  0xc2   : > { %s4306_s28 = scalar_lea.vmem %s4777_s5, %s3225_s24 }
  0xc3   : > { %s1189_s7 = scalar_lea.vmem %s4774_s0, %s4250_s1  ;;  %s1002_s0 = scalar_lea.vmem [#allocation14], %s4239_s11 }
  0xc4   : > { %s1203_s17 = scalar_lea.vmem %s4778_s22, %s4250_s1 }
  0xc5   : > { %v1208_v0 = vld [vmem:[#allocation3] sm:$0xff]  ;;  %vm1210_vm0 = vcmask 261120   ;;  %v1209_v1 = vld [vmem:[#allocation3 + $0x8] sm:$0xff] }
  0xc6   : > { %1211 = vst.msk [vmem:[#allocation17] sm:$0xff] %vm1210_vm0, %v1208_v0 }
  0xc7   : > { %1212 = vst.msk [vmem:[#allocation17 + $0x8] sm:$0xff] %vm1210_vm0, %v1209_v1 }
  0xc8 PF: > { %v1224_v2 = vld [vmem:[%s1158_s27 + $0x18] sm:$0xff]  ;;  %v1223_v3 = vld [vmem:[%s1158_s27 + $0x10] sm:$0xff]  ;;  %v1222_v4 = vld [vmem:[%s1158_s27 + $0x8] sm:$0xff]  ;;  %vm1229_vm1 = vcmask 261120   ;;  %s4779_s16 = sld [smem:[#allocation31_spill]]  ;;  %s3849_s21 = smov 96  }
  0xc9   : > { %1248 = vmatpush.msra.mxu0 %v1224_v2  ;;  %v1221_v5 = vld [vmem:[%s1158_s27] sm:$0xff]  ;;  %s3848_s27 = smov 88   ;;  %s3850_s14 = smov 80   ;;  %vm1264_vm2 = vcmask 64512   ;;  %v1217_v33 = vld [vmem:[#allocation8] sm:$0xff]  ;;  %v1218_v37 = vld [vmem:[#allocation8 + $0x8] sm:$0xff] }
  0xca   : > { %s3851_s24 = smov 120   ;;  %s3852_s2 = smov 72   ;;  %vm1532_vm3 = vcmask 130112   ;;  %vm1673_vm4 = vcmask 195712   ;;  %vm1814_vm5 = vcmask 261312  }
  0xcb   : > { %1249 = vmatpush.msra.mxu0 %v1223_v3  ;;  %s3853_s5 = smov 112   ;;  %s3854_s12 = smov 104  }
  0xcc   : > { %s3855_s10 = smov 64   ;;  %s3856_s22 = smov 48  }
  0xcd   : > { %v4321_v6 = vld [vmem:[#allocation17] sm:$0xff]  ;;  %1250 = vmatpush.msra.mxu0 %v1222_v4  ;;  %s3857_s13 = smov 56   ;;  %s3858_s18 = smov 40  }
  0xce   : > { %v4325_v7 = vld [vmem:[#allocation17 + $0x8] sm:$0xff]  ;;  %s4780_s15 = scalar_lea.vmem %s4779_s16, %s4250_s1  ;;  %s3859_s16 = smov 8  }
  0xcf   : > { %1251 = vmatpush.msra.mxu0 %v1221_v5  ;;  %v3371_v8 = vld [vmem:[%s4780_s15] ss:$0 sm:$0xff]  ;;  %s3860_s15 = smov 16   ;;  %s4794_s11 = sld [smem:[#allocation50_spill]] }
  0xd0   : > { %3153 = vmatmul.msk.f32.vlgmr.msra.gmra.mxu0 %vm1229_vm1, %v4321_v6  ;;  %p3299_p5 = scmp.eq.s32.totalorder %s4009_s6, 1 }
  0xd8   : > { %3154 = vmatmul.msk.f32.gmra.mxu0 %vm1229_vm1, %v4325_v7 }
 0x14d   : > { %v1253_v9 = vpop.f32.mrf.mxu0 }
 0x14e   : > { %v4334_v10 = vadd.f32 %v3371_v8, %v1253_v9 }
 0x150   : > { %1396 = vrot.lane.b32.xlu2 %v4334_v10, %s3848_s27  ;;  %1262 = vrot.lane.b32.xlu0 %v4334_v10, %s3849_s21  ;;  %v1259_v14 = vmul.f32 0.35355338, %v4334_v10 }
 0x155   : > { %v1256_v11 = vpop.f32.mrf.mxu0 }
 0x156   : > { %v4340_v12 = vadd.f32 %v3371_v8, %v1256_v11 }
 0x158   : > { %1424 = vrot.lane.b32.xlu1 %v4340_v12, %s3848_s27  ;;  %1537 = vrot.lane.b32.xlu2 %v4334_v10, %s3850_s14  ;;  %v1260_v13 = vmul.f32 0.35355338, %v4340_v12  ;;  %v3356_v15 = vpack.i.bf16 %v4340_v12, %v4334_v10 }
 0x159   : > { %1291 = vrot.lane.b32.xlu0 %v4340_v12, %s3849_s21 }
 0x160   : > { %1422 = vrot.lane.b32.xlu1 %v1260_v13, %s3851_s24  ;;  %1678 = vrot.lane.b32.xlu2 %v4334_v10, %s3852_s2 }
 0x161   : > { %1394 = vrot.lane.b32.xlu0 %v1259_v14, %s3851_s24 }
 0x168   : > { %1563 = vrot.lane.b32.xlu2 %v1260_v13, %s3853_s5  ;;  %1535 = vrot.lane.b32.xlu1 %v1259_v14, %s3853_s5 }
 0x169   : > { %1676 = vrot.lane.b32.xlu0 %v1259_v14, %s3854_s12 }
 0x170   : > { %3357 = vrot.lane.b32.xlu2 %v3356_v15, %s3855_s10  ;;  %1565 = vrot.lane.b32.xlu1 %v4340_v12, %s3850_s14  ;;  %s3861_s10 = smov 24  }
 0x171   : > { %1706 = vrot.lane.b32.xlu0 %v4340_v12, %s3852_s2 }
 0x178   : > { %1704 = vrot.lane.b32.xlu1 %v1260_v13, %s3854_s12 }
 0x1aa   : > { %v1397_v16 = vpop.permute.xlu2 %1396 }
 0x1b2   : > { %v1538_v17 = vpop.permute.xlu2 %1537 }
 0x1ba   : > { %v1679_v18 = vpop.permute.xlu2 %1678 }
 0x1c2   : > { %v1564_v19 = vpop.permute.xlu2 %1563  ;;  %v1263_v20 = vpop.permute.xlu0 %1262 }
 0x1c3   : > { %3155 = vmatpush.xpose.msk.msra.mxu1 %vm1264_vm2, %v1263_v20 }
 0x1c6   : > { %3156 = vmatmul.msk.f32.vlgmr.msra.gmra.mxu1 %vm1264_vm2, %v1259_v14 }
 0x1c7   : > { %3161 = vmatpush.xpose.msk.msrb.mxu1 %vm1264_vm2, %v1397_v16 }
 0x1ca   : > { %v1425_v21 = vpop.permute.xlu1 %1424  ;;  %v3358_v22 = vpop.permute.xlu2 %3357 }
 0x1cb   : > { %v1292_v23 = vpop.permute.xlu0 %1291  ;;  %3163 = vmatpush.xpose.msk.msra.mxu2 %vm1264_vm2, %v1425_v21  ;;  %v3359_v24 = vunpack.i.l.bf16 %v3358_v22  ;;  %v3360_v25 = vunpack.i.h.bf16 %v3358_v22 }
 0x1cc   : > { %3157 = vmatpush.xpose.msk.msrb.mxu0 %vm1264_vm2, %v1292_v23 }
 0x1cd   : > { %1361 = vmatpush.msra.mxu3 %v3359_v24 }
 0x1cf   : > { %3167 = vmatpush.xpose.msk.msrb.mxu2 %vm1264_vm2, %v1538_v17  ;;  %1387 = vmatpush.msrb.mxu3 %v3360_v25 }
 0x1d0   : > { %3158 = vmatmul.msk.f32.vlgmr.msrb.gmra.mxu0 %vm1264_vm2, %v1260_v13 }
 0x1d2   : > { %v1423_v26 = vpop.permute.xlu1 %1422 }
 0x1d3   : > { %v1395_v27 = vpop.permute.xlu0 %1394  ;;  %3164 = vmatmul.msk.f32.vlgmr.msra.gmra.mxu2 %vm1264_vm2, %v1423_v26 }
 0x1d4   : > { %3162 = vmatmul.msk.f32.vlgmr.msrb.gmra.mxu1 %vm1264_vm2, %v1395_v27  ;;  %3173 = vmatpush.xpose.msk.msra.mxu2 %vm1264_vm2, %v1679_v18 }
 0x1da   : > { %v1536_v28 = vpop.permute.xlu1 %1535 }
 0x1db   : > { %v1677_v29 = vpop.permute.xlu0 %1676  ;;  %3168 = vmatmul.msk.f32.vlgmr.msrb.gmra.mxu2 %vm1264_vm2, %v1536_v28 }
 0x1e2   : > { %v1566_v30 = vpop.permute.xlu1 %1565 }
 0x1e3   : > { %v1707_v31 = vpop.permute.xlu0 %1706  ;;  %3169 = vmatpush.xpose.msk.msra.mxu0 %vm1264_vm2, %v1566_v30  ;;  %3174 = vmatmul.msk.f32.vlgmr.msra.gmra.mxu2 %vm1264_vm2, %v1677_v29 }
 0x1e6   : > { %3170 = vmatmul.msk.f32.vlgmr.msra.gmra.mxu0 %vm1264_vm2, %v1564_v19 }
 0x1e7   : > { %3175 = vmatpush.xpose.msk.msrb.mxu0 %vm1264_vm2, %v1707_v31 }
 0x1ea   : > { %v1705_v32 = vpop.permute.xlu1 %1704 }
 0x1ee   : > { %3176 = vmatmul.msk.f32.vlgmr.msrb.gmra.mxu0 %vm1264_vm2, %v1705_v32 }
 0x243   : > { %v1287_v34 = vpop.f32.mrf.mxu1 }
 0x244   : > { %v1288_v35 = vadd.f32 %v1287_v34, %v1217_v33 }
 0x246   : > { %v1318_v36 = vsel %vm1264_vm2, %v1288_v35, -inf }
 0x247   : > { %1319 = vmax.xlane.f32.xlu2 %v1318_v36 }
 0x24d   : > { %v1315_v38 = vpop.f32.mrf.mxu0 }
 0x24e   : > { %v1316_v39 = vadd.f32 %v1315_v38, %v1218_v37 }
 0x250   : > { %v1321_v40 = vsel %vm1264_vm2, %v1316_v39, -inf }
 0x251   : > { %1322 = vmax.xlane.f32.xlu0 %v1321_v40  ;;  %v1419_v41 = vpop.f32.mrf.mxu1 }
 0x252   : > { %v1420_v42 = vadd.f32 %v1419_v41, %v1217_v33 }
 0x254   : > { %v1450_v43 = vsel %vm1264_vm2, %v1420_v42, -inf }
 0x255   : > { %1451 = vmax.xlane.f32.xlu1 %v1450_v43 }
 0x256   : > { %v1447_v44 = vpop.f32.mrf.mxu2 }
 0x257   : > { %v1448_v45 = vadd.f32 %v1447_v44, %v1218_v37 }
 0x259   : > { %v1453_v46 = vsel %vm1264_vm2, %v1448_v45, -inf }
 0x25a   : > { %1454 = vmax.xlane.f32.xlu0 %v1453_v46 }
 0x25e   : > { %v1560_v47 = vpop.f32.mrf.mxu2 }
 0x25f   : > { %v1561_v48 = vadd.f32 %v1560_v47, %v1217_v33 }
 0x261   : > { %v1591_v49 = vsel %vm1264_vm2, %v1561_v48, -inf }
 0x262   : > { %1592 = vmax.xlane.f32.xlu2 %v1591_v49 }
 0x263   : > { %v1588_v53 = vpop.f32.mrf.mxu0 }
 0x264   : > { %v1589_v55 = vadd.f32 %v1588_v53, %v1218_v37 }
 0x266   : > { %v1701_v50 = vpop.f32.mrf.mxu2  ;;  %v1594_v57 = vsel %vm1264_vm2, %v1589_v55, -inf }
 0x267   : > { %v1702_v51 = vadd.f32 %v1701_v50, %v1217_v33 }
 0x269   : > { %v1732_v52 = vsel %vm1264_vm2, %v1702_v51, -inf }
 0x26a   : > { %1733 = vmax.xlane.f32.xlu2 %v1732_v52 }
 0x26b   : > { %v1729_v54 = vpop.f32.mrf.mxu0 }
 0x26c   : > { %v1730_v56 = vadd.f32 %v1729_v54, %v1218_v37 }
 0x26e   : > { %1613 = vrot.lane.b32.xlu1 %v4334_v10, %s3856_s22  ;;  %1472 = vrot.lane.b32.xlu0 %v4334_v10, %s3857_s13  ;;  %v1735_v58 = vsel %vm1264_vm2, %v1730_v56, -inf }
 0x298   : > { %1595 = vmax.xlane.f32.xlu1 %v1594_v57  ;;  %1736 = vmax.xlane.f32.xlu0 %v1735_v58 }
 0x2ba   : > { %v1320_v59 = vpop.xlane.xlu2 %1319 }
 0x2bb   : > { %v1324_v60 = vsub.f32 %v1288_v35, %v1320_v59 }
 0x2bd   : > { %v1326_v61 = vmul.f32 1.442695, %v1324_v60 }
 0x2bf   : > { %3384 = vpow2.f32 %v1326_v61 }
 0x2c4   : > { %v1323_v62 = vpop.xlane.xlu0 %1322 }
 0x2c5   : > { %v1325_v63 = vsub.f32 %v1316_v39, %v1323_v62  ;;  %v3385_v0 = vpop.eup %3384 }
 0x2c6   : > { %v1330_v2 = vsel %vm1264_vm2, %v3385_v0, 0.0 }
 0x2c7   : > { %v1328_v1 = vmul.f32 1.442695, %v1325_v63  ;;  %1331 = vadd.xlane.f32.xlu2 %v1330_v2 }
 0x2c8   : > { %v1452_v3 = vpop.xlane.xlu1 %1451 }
 0x2c9   : > { %3386 = vpow2.f32 %v1328_v1  ;;  %v1456_v4 = vsub.f32 %v1420_v42, %v1452_v3 }
 0x2cb   : > { %v1458_v5 = vmul.f32 1.442695, %v1456_v4 }
 0x2cd   : > { %3388 = vpow2.f32 %v1458_v5  ;;  %v1455_v8 = vpop.xlane.xlu0 %1454 }
 0x2ce   : > { %v1457_v11 = vsub.f32 %v1448_v45, %v1455_v8 }
 0x2cf   : > { %v3387_v9 = vpop.eup %3386 }
 0x2d0   : > { %v1333_v13 = vsel %vm1264_vm2, %v3387_v9, 0.0  ;;  %v1460_v14 = vmul.f32 1.442695, %v1457_v11 }
 0x2d1   : > { %1334 = vadd.xlane.f32.xlu1 %v1333_v13 }
 0x2d2   : > { %3390 = vpow2.f32 %v1460_v14 }
 0x2d3   : > { %v3389_v15 = vpop.eup %3388 }
 0x2d4   : > { %v1462_v16 = vsel %vm1264_vm2, %v3389_v15, 0.0 }
 0x2d5   : > { %1463 = vadd.xlane.f32.xlu0 %v1462_v16  ;;  %v1593_v17 = vpop.xlane.xlu2 %1592  ;;  %v1821_v16 = vld [vmem:[%s4263_s4 + $0x10] sm:$0xff] }
 0x2d6   : > { %v1597_v18 = vsub.f32 %v1561_v48, %v1593_v17  ;;  %v1820_v17 = vld [vmem:[%s4263_s4 + $0x8] sm:$0xff] }
 0x2d8   : > { %v1599_v19 = vmul.f32 1.442695, %v1597_v18  ;;  %v4395_v20 = vpop.eup %3390  ;;  %v1819_v18 = vld [vmem:[%s4263_s4] sm:$0xff] }
 0x2d9   : > { %v1465_v21 = vsel %vm1264_vm2, %v4395_v20, 0.0 }
 0x2da   : > { %3392 = vpow2.f32 %v1599_v19 }
 0x2dd   : > { %1466 = vadd.xlane.f32.xlu0 %v1465_v21  ;;  %v1734_v22 = vpop.xlane.xlu2 %1733 }
 0x2de   : > { %v1738_v23 = vsub.f32 %v1702_v51, %v1734_v22 }
 0x2df   : > { %1754 = vrot.lane.b32.xlu2 %v4334_v10, %s3858_s18 }
 0x2e0   : > { %v3393_v24 = vpop.eup %3392  ;;  %v1740_v25 = vmul.f32 1.442695, %v1738_v23  ;;  %v1614_v29 = vpop.permute.xlu1 %1613 }
 0x2e1   : > { %v1603_v26 = vsel %vm1264_vm2, %v3393_v24, 0.0  ;;  %v1473_v32 = vpop.permute.xlu0 %1472 }
 0x2e2   : > { %3394 = vpow2.f32 %v1740_v25  ;;  %1604 = vadd.xlane.f32.xlu1 %v1603_v26 }
 0x2e8   : > { %v3395_v27 = vpop.eup %3394 }
 0x2e9   : > { %v1744_v28 = vsel %vm1264_vm2, %v3395_v27, 0.0 }
 0x2ea   : > { %1745 = vadd.xlane.f32.xlu1 %v1744_v28 }
 0x2f1   : > { %1639 = vrot.lane.b32.xlu0 %v4340_v12, %s3856_s22  ;;  %s4784_s22 = sld [smem:[#allocation37_spill]] }
 0x303   : > { %1498 = vrot.lane.b32.xlu1 %v4340_v12, %s3857_s13  ;;  %s4781_s13 = sld [smem:[#allocation33_spill]] }
 0x30b   : > { %v1596_v30 = vpop.xlane.xlu1 %1595  ;;  %v1737_v35 = vpop.xlane.xlu0 %1736 }
 0x30c   : > { %v1598_v31 = vsub.f32 %v1589_v55, %v1596_v30  ;;  %v1739_v36 = vsub.f32 %v1730_v56, %v1737_v35 }
 0x30e   : > { %v1601_v10 = vmul.f32 1.442695, %v1598_v31  ;;  %v1742_v37 = vmul.f32 1.442695, %v1739_v36 }
 0x310   : > { %3396 = vpow2.f32 %v1601_v10 }
 0x311   : > { %3398 = vpow2.f32 %v1742_v37 }
 0x316   : > { %v3397_v33 = vpop.eup %3396 }
 0x317   : > { %v1606_v34 = vsel %vm1264_vm2, %v3397_v33, 0.0  ;;  %v3399_v38 = vpop.eup %3398 }
 0x318   : > { %1607 = vadd.xlane.f32.xlu2 %v1606_v34  ;;  %v1747_v39 = vsel %vm1264_vm2, %v3399_v38, 0.0 }
 0x32d   : > { %1748 = vadd.xlane.f32.xlu1 %v1747_v39 }
 0x330   : > { %1780 = vrot.lane.b32.xlu2 %v4340_v12, %s3858_s18  ;;  %s4782_s18 = scalar_lea.vmem %s4781_s13, %s4250_s1  ;;  %s4785_s13 = scalar_lea.vmem %s4784_s22, %s4250_s1 }
 0x331   : > { %s3864_s22 = smov 128  }
 0x33a   : > { %v1332_v40 = vpop.xlane.xlu2 %1331 }
 0x33b   : > { %3400 = vrcp.f32 %v1332_v40 }
 0x341   : > { %v3401_v41 = vpop.eup %3400 }
 0x342   : > { %v1338_v42 = vmul.f32 %v3401_v41, %v3385_v0  ;;  %v1755_v49 = vpop.permute.xlu2 %1754  ;;  %v1967_v41 = vld [vmem:[%s4242_s25 + $0x18] sm:$0xff] }
 0x344   : > { %v1335_v43 = vpop.xlane.xlu1 %1334  ;;  %3159 = vmatmul.msk.f32.vlgmr.msra.gmra.mxu3 %vm1264_vm2, %v1338_v42 }
 0x345   : > { %3402 = vrcp.f32 %v1335_v43  ;;  %1493 = vmatpush.msra.mxu3 %v1473_v32  ;;  %v1965_v43 = vld [vmem:[%s4242_s25 + $0x8] sm:$0xff] }
 0x348   : > { %v1464_v44 = vpop.xlane.xlu0 %1463 }
 0x349   : > { %3404 = vrcp.f32 %v1464_v44  ;;  %v1964_v44 = vld [vmem:[%s4242_s25] sm:$0xff] }
 0x34b   : > { %v3403_v45 = vpop.eup %3402 }
 0x34c   : > { %v1339_v46 = vmul.f32 %v3403_v45, %v3387_v9 }
 0x34e   : > { %3160 = vmatmul.msk.f32.vlgmr.msrb.gmra.mxu3 %vm1264_vm2, %v1339_v46  ;;  %v1215_v46 = vld [vmem:[#allocation6] sm:$0xff] }
 0x34f   : > { %1634 = vmatpush.msrb.mxu3 %v1614_v29  ;;  %v3405_v47 = vpop.eup %3404 }
 0x350   : > { %v1470_v48 = vmul.f32 %v3405_v47, %v3389_v15  ;;  %v1467_v55 = vpop.xlane.xlu0 %1466  ;;  %v1822_v15 = vld [vmem:[%s4263_s4 + $0x18] sm:$0xff] }
 0x351   : > { %1845 = vmatpush.msrb.mxu2 %v1822_v15 }
 0x353   : > { %1846 = vmatpush.msrb.mxu2 %v1821_v16 }
 0x355   : > { %v1605_v12 = vpop.xlane.xlu1 %1604  ;;  %1847 = vmatpush.msrb.mxu2 %v1820_v17 }
 0x356   : > { %3165 = vmatmul.msk.f32.vlgmr.msra.gmra.mxu3 %vm1264_vm2, %v1470_v48  ;;  %3406 = vrcp.f32 %v1605_v12  ;;  %v1928_v48 = vld [vmem:[%s4272_s9 + $0x18] sm:$0xff]  ;;  %v1926_v12 = vld [vmem:[%s4272_s9 + $0x8] sm:$0xff] }
 0x357   : > { %1775 = vmatpush.msra.mxu3 %v1755_v49  ;;  %1848 = vmatpush.msrb.mxu2 %v1819_v18  ;;  %v1927_v49 = vld [vmem:[%s4272_s9 + $0x10] sm:$0xff] }
 0x358   : > { %1951 = vmatpush.msra.mxu0 %v1928_v48 }
 0x35a   : > { %1952 = vmatpush.msra.mxu0 %v1927_v49 }
 0x35c   : > { %v3407_v50 = vpop.eup %3406  ;;  %1953 = vmatpush.msra.mxu0 %v1926_v12 }
 0x35d   : > { %v1611_v51 = vmul.f32 %v3407_v50, %v3393_v24  ;;  %v1746_v52 = vpop.xlane.xlu1 %1745 }
 0x35e   : > { %3408 = vrcp.f32 %v1746_v52 }
 0x35f   : > { %3171 = vmatmul.msk.f32.vlgmr.msrb.gmra.mxu3 %vm1264_vm2, %v1611_v51  ;;  %3410 = vrcp.f32 %v1467_v55  ;;  %v1925_v51 = vld [vmem:[%s4272_s9] sm:$0xff]  ;;  %s4786_s9 = sld [smem:[#allocation35_spill]] }
 0x360   : > { %1990 = vmatpush.msrb.mxu3 %v1967_v41  ;;  %1954 = vmatpush.msra.mxu0 %v1925_v51 }
 0x363   : > { %v1640_v59 = vpop.permute.xlu0 %1639 }
 0x364   : > { %v3409_v53 = vpop.eup %3408 }
 0x365   : > { %v1752_v54 = vmul.f32 %v3409_v53, %v3395_v27  ;;  %v3411_v56 = vpop.eup %3410  ;;  %v3372_v27 = vld [vmem:[%s4782_s18] ss:$0 sm:$0xff]  ;;  %s4787_s4 = scalar_lea.vmem %s4786_s9, %s4250_s1 }
 0x366   : > { %v1471_v57 = vmul.f32 %v3411_v56, %v4395_v20 }
 0x367   : > { %3177 = vmatmul.msk.f32.vlgmr.msra.gmra.mxu3 %vm1264_vm2, %v1752_v54 }
 0x375   : > { %v1499_v58 = vpop.permute.xlu1 %1498 }
 0x376   : > { %1519 = vmatpush.msra.mxu1 %v1499_v58 }
 0x377   : > { %3166 = vmatmul.msk.f32.vlgmr.msra.gmra.mxu1 %vm1264_vm2, %v1471_v57 }
 0x378   : > { %1660 = vmatpush.msrb.mxu1 %v1640_v59 }
 0x38b   : > { %v1608_v60 = vpop.xlane.xlu2 %1607 }
 0x38c   : > { %3412 = vrcp.f32 %v1608_v60 }
 0x392   : > { %v3413_v61 = vpop.eup %3412 }
 0x393   : > { %v1612_v62 = vmul.f32 %v3413_v61, %v3397_v33  ;;  %v1781_v63 = vpop.permute.xlu2 %1780 }
 0x394   : > { %1801 = vmatpush.msra.mxu1 %v1781_v63 }
 0x395   : > { %3172 = vmatmul.msk.f32.vlgmr.msrb.gmra.mxu1 %vm1264_vm2, %v1612_v62 }
 0x3a0   : > { %v1749_v0 = vpop.xlane.xlu1 %1748 }
 0x3a1   : > { %3414 = vrcp.f32 %v1749_v0 }
 0x3a7   : > { %v3415_v1 = vpop.eup %3414 }
 0x3a8   : > { %v1753_v2 = vmul.f32 %v3415_v1, %v3399_v38  ;;  %v3862_v38 = vmov 32.0  }
 0x3a9   : > { %3416 = vrcp.f32 %v3862_v38 }
 0x3aa   : > { %3178 = vmatmul.msk.f32.vlgmr.msra.gmra.mxu1 %vm1264_vm2, %v1753_v2  ;;  %v3373_v2 = vld [vmem:[%s993_s30] ss:$0 sm:$0xff] }
 0x3af   : > { %v3417_v39 = vpop.eup %3416 }
 0x3b0   : > { %v1865_v40 = vmul.f32 32.0, %v3417_v39  ;;  %vm1869_vm6 = vweird.f32 %v3417_v39 }
 0x3b2   : > { %v1866_v42 = vsub.f32 1.0, %v1865_v40 }
 0x3b4   : > { %v1867_v45 = vmul.f32 %v3417_v39, %v1866_v42 }
 0x3b6   : > { %v1868_v47 = vadd.f32 %v3417_v39, %v1867_v45 }
 0x3b8   : > { %v4462_v50 = vsel %vm1869_vm6, %v3417_v39, %v1868_v47  ;;  %v1219_v47 = vld [vmem:[#allocation9] sm:$0xff] }
 0x3c7   : > { %v1363_v3 = vpop.f32.mrf.mxu3 }
 0x3c8   : > { %1392 = vst.msk [vmem:[#allocation2] sm:$0xff] %vm1264_vm2, %v1363_v3 }
 0x3d1   : > { %v1389_v4 = vpop.f32.mrf.mxu3 }
 0x3d2   : > { %1393 = vst.msk [vmem:[#allocation2 + $0x8] sm:$0xff] %vm1264_vm2, %v1389_v4 }
 0x3d9   : > { %v1495_v5 = vpop.f32.mrf.mxu3 }
 0x3da   : > { %1526 = vrot.lane.b32.xlu0 %v1495_v5, %s3859_s16  ;;  %v3374_v5 = vld [vmem:[%s1186_s29] ss:$0 sm:$0xff] }
 0x3e2   : > { %v1636_v8 = vpop.f32.mrf.mxu3 }
 0x3e3   : > { %1667 = vrot.lane.b32.xlu1 %v1636_v8, %s3860_s15 }
 0x3ea   : > { %v1777_v9 = vpop.f32.mrf.mxu3 }
 0x3eb   : > { %1808 = vrot.lane.b32.xlu2 %v1777_v9, %s3861_s10 }
 0x3f4   : > { %v1521_v11 = vpop.f32.mrf.mxu1 }
 0x3f5   : > { %1528 = vrot.lane.b32.xlu0 %v1521_v11, %s3859_s16  ;;  %v1216_v11 = vld [vmem:[#allocation6 + $0x8] sm:$0xff] }
 0x412   : > { %v1662_v13 = vpop.f32.mrf.mxu1 }
 0x413   : > { %1669 = vrot.lane.b32.xlu2 %v1662_v13, %s3860_s15 }
 0x427   : > { %v1803_v14 = vpop.f32.mrf.mxu1 }
 0x428   : > { %1810 = vrot.lane.b32.xlu0 %v1803_v14, %s3861_s10 }
 0x445   : > { %v1809_v21 = vpop.permute.xlu2 %1808 }
 0x44c   : > { %v1527_v19 = vpop.permute.xlu0 %1526 }
 0x44d   : > { %1533 = vst.msk [vmem:[#allocation2] sm:$0xff] %vm1532_vm3, %v1527_v19 }
 0x455   : > { %v1668_v20 = vpop.permute.xlu1 %1667 }
 0x456   : > { %1674 = vst.msk [vmem:[#allocation2] sm:$0xff] %vm1673_vm4, %v1668_v20 }
 0x457   : > { %1815 = vst.msk [vmem:[#allocation2] sm:$0xff] %vm1814_vm5, %v1809_v21 }
 0x45e   : > { %v1817_v22 = vld [vmem:[#allocation2] sm:$0xff] }
 0x45f   : > { %3179 = vmatmul.msk.f32.vlgmr.msrb.gmra.mxu2 %vm1229_vm1, %v1817_v22 }
 0x467   : > { %v1529_v23 = vpop.permute.xlu0 %1528 }
 0x468   : > { %1534 = vst.msk [vmem:[#allocation2 + $0x8] sm:$0xff] %vm1532_vm3, %v1529_v23 }
 0x46d   : > { %v1670_v24 = vpop.permute.xlu2 %1669 }
 0x46e   : > { %1675 = vst.msk [vmem:[#allocation2 + $0x8] sm:$0xff] %vm1673_vm4, %v1670_v24 }
 0x49a   : > { %v1811_v25 = vpop.permute.xlu0 %1810 }
 0x49b   : > { %1816 = vst.msk [vmem:[#allocation2 + $0x8] sm:$0xff] %vm1814_vm5, %v1811_v25 }
 0x4a2   : > { %v1818_v26 = vld [vmem:[#allocation2 + $0x8] sm:$0xff] }
 0x4a3   : > { %3180 = vmatmul.msk.f32.gmra.mxu2 %vm1229_vm1, %v1818_v26 }
 0x4e2   : > { %v1850_v28 = vpop.f32.mrf.mxu2 }
 0x4e3   : > { %v1851_v29 = vadd.f32 %v3372_v27, %v1850_v28 }
 0x4e5   : > { %v1856_v30 = vadd.f32 %v1851_v29, %v4321_v6 }
 0x4e7   : > { %v1858_v31 = vsel %vm1229_vm1, %v1856_v30, 0.0  ;;  %v1873_v10 = vmul.f32 %v1856_v30, %v1856_v30 }
 0x4e8   : > { %1859 = vadd.xlane.f32.xlu2 %v1858_v31  ;;  %v3375_v31 = vld [vmem:[%s4785_s13] ss:$0 sm:$0xff] }
 0x4e9   : > { %v1875_v32 = vsel %vm1229_vm1, %v1873_v10, 0.0 }
 0x4ea   : > { %1876 = vadd.xlane.f32.xlu0 %v1875_v32 }
 0x526   : > { %v1853_v33 = vpop.f32.mrf.mxu2 }
 0x527   : > { %v1854_v34 = vadd.f32 %v3372_v27, %v1853_v33  ;;  %v3376_v33 = vld [vmem:[%s4787_s4] ss:$0 sm:$0xff] }
 0x529   : > { %v4447_v35 = vadd.f32 %v1854_v34, %v4325_v7  ;;  %v1966_v7 = vld [vmem:[%s4242_s25 + $0x10] sm:$0xff] }
 0x52a   : > { %1991 = vmatpush.msrb.mxu3 %v1966_v7 }
 0x52b   : > { %v1861_v36 = vsel %vm1229_vm1, %v4447_v35, 0.0  ;;  %v1874_v6 = vmul.f32 %v4447_v35, %v4447_v35 }
 0x52c   : > { %1862 = vadd.xlane.f32.xlu1 %v1861_v36  ;;  %1992 = vmatpush.msrb.mxu3 %v1965_v43 }
 0x52d   : > { %v1878_v37 = vsel %vm1229_vm1, %v1874_v6, 0.0 }
 0x52e   : > { %1879 = vadd.xlane.f32.xlu2 %v1878_v37  ;;  %1993 = vmatpush.msrb.mxu3 %v1964_v44 }
 0x52f   : > { %3183 = vmatmul.msk.f32.vlgmr.msrb.gmra.mxu3 %vm1229_vm1, %v1215_v46 }
 0x537   : > { %3184 = vmatmul.msk.f32.gmra.mxu3 %vm1229_vm1, %v1216_v11 }
 0x55b   : > { %v1860_v52 = vpop.xlane.xlu2 %1859 }
 0x55c   : > { %v1871_v53 = vmul.f32 %v4462_v50, %v1860_v52 }
 0x55d   : > { %v1877_v54 = vpop.xlane.xlu0 %1876 }
 0x55e   : > { %v1883_v55 = vmul.f32 %v1871_v53, %v1871_v53  ;;  %v1881_v56 = vmul.f32 %v1877_v54, %v4462_v50  ;;  %v1887_v1 = vsub.f32 %v1856_v30, %v1871_v53 }
 0x560   : > { %v1885_v57 = vsub.f32 %v1881_v56, %v1883_v55  ;;  %v1220_v56 = vld [vmem:[#allocation9 + $0x8] sm:$0xff] }
 0x562   : > { %v1889_v58 = vadd.f32 1e-05, %v1885_v57 }
 0x564   : > { %3418 = vrsqrt.f32 %v1889_v58  ;;  %vm1897_vm8 = vweird.f32 %v1889_v58 }
 0x56a   : > { %v3419_v59 = vpop.eup %3418 }
 0x56b   : > { %v1892_v60 = vmul.f32 %v3419_v59, %v1889_v58  ;;  %vm1898_vm7 = vweird.f32 %v3419_v59 }
 0x56c   : > { %vm1899_vm9 = vmor %vm1897_vm8, %vm1898_vm7 }
 0x56d   : > { %v1893_v61 = vmul.f32 %v3419_v59, %v1892_v60 }
 0x56f   : > { %v1894_v62 = vmul.f32 0.5, %v1893_v61 }
 0x571   : > { %v1895_v63 = vsub.f32 1.5, %v1894_v62 }
 0x573   : > { %v1896_v0 = vmul.f32 %v3419_v59, %v1895_v63 }
 0x575   : > { %v1900_v3 = vsel %vm1899_vm9, %v3419_v59, %v1896_v0 }
 0x576   : > { %v1911_v4 = vmul.f32 %v1900_v3, %v1887_v1 }
 0x578   : > { %v1917_v8 = vmul.f32 %v3373_v2, %v1911_v4 }
 0x57a   : > { %v4474_v9 = vadd.f32 %v3374_v5, %v1917_v8 }
 0x57c   : > { %3181 = vmatmul.msk.f32.vlgmr.msra.gmra.mxu0 %vm1229_vm1, %v4474_v9 }
 0x59f   : > { %v1863_v13 = vpop.xlane.xlu1 %1862 }
 0x5a0   : > { %v1872_v14 = vmul.f32 %v4462_v50, %v1863_v13 }
 0x5a1   : > { %v1880_v15 = vpop.xlane.xlu2 %1879 }
 0x5a2   : > { %v1884_v16 = vmul.f32 %v1872_v14, %v1872_v14  ;;  %v1882_v17 = vmul.f32 %v1880_v15, %v4462_v50  ;;  %v1888_v26 = vsub.f32 %v4447_v35, %v1872_v14 }
 0x5a4   : > { %v1886_v18 = vsub.f32 %v1882_v17, %v1884_v16 }
 0x5a6   : > { %v1890_v19 = vadd.f32 1e-05, %v1886_v18 }
 0x5a8   : > { %3420 = vrsqrt.f32 %v1890_v19  ;;  %vm1907_vm11 = vweird.f32 %v1890_v19 }
 0x5ae   : > { %v3421_v20 = vpop.eup %3420 }
 0x5af   : > { %v1902_v21 = vmul.f32 %v3421_v20, %v1890_v19  ;;  %vm1908_vm10 = vweird.f32 %v3421_v20 }
 0x5b0   : > { %vm1909_vm12 = vmor %vm1907_vm11, %vm1908_vm10 }
 0x5b1   : > { %v1903_v22 = vmul.f32 %v3421_v20, %v1902_v21 }
 0x5b2   : > { %v1995_v10 = vpop.f32.mrf.mxu3 }
 0x5b3   : > { %v1904_v23 = vmul.f32 0.5, %v1903_v22  ;;  %v4491_v32 = vadd.f32 %v3375_v31, %v1995_v10 }
 0x5b5   : > { %v1905_v24 = vsub.f32 1.5, %v1904_v23  ;;  %2131 = vrot.lane.b32.xlu0 %v4491_v32, %s3851_s24  ;;  %3185 = vmatpush.xpose.msk.msrb.mxu1 %vm1264_vm2, %v4491_v32 }
 0x5b6   : > { %2271 = vrot.lane.b32.xlu2 %v4491_v32, %s3853_s5 }
 0x5b7   : > { %v1906_v25 = vmul.f32 %v3421_v20, %v1905_v24 }
 0x5b9   : > { %v1910_v27 = vsel %vm1909_vm12, %v3421_v20, %v1906_v25 }
 0x5ba   : > { %v1912_v28 = vmul.f32 %v1910_v27, %v1888_v26  ;;  %v1998_v6 = vpop.f32.mrf.mxu3 }
 0x5bb   : > { %v4510_v37 = vadd.f32 %v3375_v31, %v1998_v6 }
 0x5bc   : > { %v1918_v29 = vmul.f32 %v3373_v2, %v1912_v28 }
 0x5bd   : > { %3187 = vmatpush.xpose.msk.msra.mxu1 %vm1264_vm2, %v4510_v37  ;;  %v4527_v7 = vpack.i.bf16 %v4510_v37, %v4491_v32 }
 0x5be   : > { %v4482_v30 = vadd.f32 %v3374_v5, %v1918_v29  ;;  %2159 = vrot.lane.b32.xlu2 %v4510_v37, %s3851_s24 }
 0x5c0   : > { %3182 = vmatmul.msk.f32.gmra.mxu0 %vm1229_vm1, %v4482_v30 }
 0x5f9   : > { %v1956_v34 = vpop.f32.mrf.mxu0 }
 0x5fa   : > { %v1957_v35 = vadd.f32 %v3376_v33, %v1956_v34 }
 0x5fc   : > { %v1962_v36 = vmul.f32 0.35355338, %v1957_v35 }
 0x5fe   : > { %2269 = vrot.lane.b32.xlu0 %v1962_v36, %s3853_s5  ;;  %2129 = vrot.lane.b32.xlu1 %v1962_v36, %s3851_s24 }
 0x5ff   : > { %3186 = vmatmul.msk.f32.vlgmr.msrb.gmra.mxu1 %vm1264_vm2, %v1962_v36 }
 0x606   : > { %2409 = vrot.lane.b32.xlu0 %v1962_v36, %s3854_s12  ;;  %2411 = vrot.lane.b32.xlu1 %v4491_v32, %s3854_s12 }
 0x60e   : > { %2299 = vrot.lane.b32.xlu0 %v4510_v37, %s3853_s5 }
 0x610   : > { %v2272_v42 = vpop.permute.xlu2 %2271 }
 0x618   : > { %v2160_v43 = vpop.permute.xlu2 %2159 }
 0x619   : > { %3193 = vmatpush.xpose.msk.msrb.mxu1 %vm1264_vm2, %v2160_v43 }
 0x627   : > { %v2132_v41 = vpop.permute.xlu0 %2131 }
 0x628   : > { %3191 = vmatpush.xpose.msk.msra.mxu3 %vm1264_vm2, %v2132_v41 }
 0x62c   : > { %3197 = vmatpush.xpose.msk.msrb.mxu3 %vm1264_vm2, %v2272_v42 }
 0x63d   : > { %v1959_v38 = vpop.f32.mrf.mxu0 }
 0x63e   : > { %v1960_v39 = vadd.f32 %v3376_v33, %v1959_v38 }
 0x640   : > { %v1963_v40 = vmul.f32 0.35355338, %v1960_v39 }
 0x642   : > { %2437 = vrot.lane.b32.xlu0 %v1963_v40, %s3854_s12  ;;  %2297 = vrot.lane.b32.xlu2 %v1963_v40, %s3853_s5 }
 0x643   : > { %2157 = vrot.lane.b32.xlu1 %v1963_v40, %s3851_s24  ;;  %3188 = vmatmul.msk.f32.vlgmr.msra.gmra.mxu1 %vm1264_vm2, %v1963_v40 }
 0x64b   : > { %2439 = vrot.lane.b32.xlu1 %v4510_v37, %s3854_s12 }
 0x653   : > { %3362 = vrot.lane.b32.xlu1 %v4527_v7, %s3849_s21  ;;  %s4788_s21 = sld [smem:[#allocation39_spill]] }
 0x670   : > { %v2130_v44 = vpop.permute.xlu1 %2129  ;;  %v2270_v45 = vpop.permute.xlu0 %2269 }
 0x671   : > { %3192 = vmatmul.msk.f32.vlgmr.msra.gmra.mxu3 %vm1264_vm2, %v2130_v44 }
 0x678   : > { %v2412_v46 = vpop.permute.xlu1 %2411  ;;  %v2410_v49 = vpop.permute.xlu0 %2409 }
 0x679   : > { %3198 = vmatmul.msk.f32.vlgmr.msrb.gmra.mxu3 %vm1264_vm2, %v2270_v45 }
 0x67a   : > { %3203 = vmatpush.xpose.msk.msra.mxu3 %vm1264_vm2, %v2412_v46 }
 0x67c   : > { %v2024_v48 = vpop.f32.mrf.mxu1 }
 0x67d   : > { %v2025_v12 = vadd.f32 %v2024_v48, %v1219_v47 }
 0x67f   : > { %v2053_v51 = vsel %vm1264_vm2, %v2025_v12, -inf }
 0x680   : > { %2054 = vmax.xlane.f32.xlu2 %v2053_v51  ;;  %v2300_v52 = vpop.permute.xlu0 %2299 }
 0x681   : > { %3204 = vmatmul.msk.f32.vlgmr.msra.gmra.mxu3 %vm1264_vm2, %v2410_v49  ;;  %3199 = vmatpush.xpose.msk.msra.mxu1 %vm1264_vm2, %v2300_v52 }
 0x69c   : > { %v2298_v54 = vpop.permute.xlu2 %2297 }
 0x6b4   : > { %v2438_v60 = vpop.permute.xlu0 %2437 }
 0x6b5   : > { %v2158_v53 = vpop.permute.xlu1 %2157 }
 0x6b6   : > { %3194 = vmatmul.msk.f32.vlgmr.msrb.gmra.mxu1 %vm1264_vm2, %v2158_v53 }
 0x6bd   : > { %v2440_v55 = vpop.permute.xlu1 %2439 }
 0x6be   : > { %3200 = vmatmul.msk.f32.vlgmr.msra.gmra.mxu1 %vm1264_vm2, %v2298_v54 }
 0x6bf   : > { %3205 = vmatpush.xpose.msk.msrb.mxu1 %vm1264_vm2, %v2440_v55 }
 0x6c0   : > { %v2050_v57 = vpop.f32.mrf.mxu1 }
 0x6c1   : > { %v2051_v58 = vadd.f32 %v2050_v57, %v1220_v56 }
 0x6c3   : > { %v2056_v59 = vsel %vm1264_vm2, %v2051_v58, -inf }
 0x6c4   : > { %2057 = vmax.xlane.f32.xlu0 %v2056_v59 }
 0x6c5   : > { %v3363_v61 = vpop.permute.xlu1 %3362 }
 0x6c6   : > { %v3365_v62 = vunpack.i.h.bf16 %v3363_v61  ;;  %v3364_v63 = vunpack.i.l.bf16 %v3363_v61  ;;  %3206 = vmatmul.msk.f32.vlgmr.msrb.gmra.mxu1 %vm1264_vm2, %v2438_v60 }
 0x6c8   : > { %2096 = vmatpush.msra.mxu2 %v3364_v63  ;;  %2122 = vmatpush.msrb.mxu0 %v3365_v62 }
 0x6f3   : > { %v2055_v0 = vpop.xlane.xlu2 %2054 }
 0x6f4   : > { %v2059_v1 = vsub.f32 %v2025_v12, %v2055_v0  ;;  %v2154_v2 = vpop.f32.mrf.mxu3 }
 0x6f5   : > { %v2155_v3 = vadd.f32 %v2154_v2, %v1219_v47 }
 0x6f6   : > { %v2061_v4 = vmul.f32 1.442695, %v2059_v1 }
 0x6f7   : > { %v2185_v5 = vsel %vm1264_vm2, %v2155_v3, -inf }
 0x6f8   : > { %3422 = vpow2.f32 %v2061_v4  ;;  %2186 = vmax.xlane.f32.xlu1 %v2185_v5 }
 0x6fc   : > { %v2294_v8 = vpop.f32.mrf.mxu3 }
 0x6fd   : > { %v2295_v11 = vadd.f32 %v2294_v8, %v1219_v47 }
 0x6fe   : > { %v3423_v13 = vpop.eup %3422 }
 0x6ff   : > { %v2065_v14 = vsel %vm1264_vm2, %v3423_v13, 0.0  ;;  %v2325_v15 = vsel %vm1264_vm2, %v2295_v11, -inf }
 0x700   : > { %2066 = vadd.xlane.f32.xlu0 %v2065_v14  ;;  %2326 = vmax.xlane.f32.xlu2 %v2325_v15 }
 0x704   : > { %v2434_v16 = vpop.f32.mrf.mxu3 }
 0x705   : > { %v4547_v17 = vadd.f32 %v2434_v16, %v1219_v47 }
 0x707   : > { %v2465_v18 = vsel %vm1264_vm2, %v4547_v17, -inf }
 0x708   : > { %2466 = vmax.xlane.f32.xlu0 %v2465_v18 }
 0x733   : > { %v2182_v19 = vpop.f32.mrf.mxu1 }
 0x734   : > { %v2183_v20 = vadd.f32 %v2182_v19, %v1220_v56 }
 0x736   : > { %v2188_v21 = vsel %vm1264_vm2, %v2183_v20, -inf }
 0x737   : > { %v2058_v22 = vpop.xlane.xlu0 %2057  ;;  %2189 = vmax.xlane.f32.xlu1 %v2188_v21 }
 0x738   : > { %v2060_v23 = vsub.f32 %v2051_v58, %v2058_v22 }
 0x73a   : > { %v2063_v24 = vmul.f32 1.442695, %v2060_v23 }
 0x73b   : > { %v2322_v25 = vpop.f32.mrf.mxu1 }
 0x73c   : > { %3424 = vpow2.f32 %v2063_v24  ;;  %v2323_v26 = vadd.f32 %v2322_v25, %v1220_v56 }
 0x73e   : > { %v2328_v27 = vsel %vm1264_vm2, %v2323_v26, -inf }
 0x73f   : > { %2329 = vmax.xlane.f32.xlu2 %v2328_v27 }
 0x742   : > { %v3425_v28 = vpop.eup %3424 }
 0x743   : > { %v2462_v29 = vpop.f32.mrf.mxu1  ;;  %v2068_v31 = vsel %vm1264_vm2, %v3425_v28, 0.0 }
 0x744   : > { %v2463_v10 = vadd.f32 %v2462_v29, %v1220_v56  ;;  %2069 = vadd.xlane.f32.xlu0 %v2068_v31 }
 0x746   : > { %v2468_v33 = vsel %vm1264_vm2, %v2463_v10, -inf }
 0x747   : > { %2469 = vmax.xlane.f32.xlu1 %v2468_v33 }
 0x758   : > { %3367 = vrot.lane.b32.xlu0 %v4527_v7, %s3848_s27 }
 0x760   : > { %2347 = vrot.lane.b32.xlu1 %v4491_v32, %s3850_s14  ;;  %2487 = vrot.lane.b32.xlu0 %v4491_v32, %s3852_s2 }
 0x768   : > { %2513 = vrot.lane.b32.xlu0 %v4510_v37, %s3852_s2 }
 0x76b   : > { %v2187_v34 = vpop.xlane.xlu1 %2186 }
 0x76c   : > { %v2191_v35 = vsub.f32 %v2155_v3, %v2187_v34 }
 0x76e   : > { %v2193_v36 = vmul.f32 1.442695, %v2191_v35 }
 0x770   : > { %3426 = vpow2.f32 %v2193_v36 }
 0x773   : > { %v2067_v6 = vpop.xlane.xlu0 %2066  ;;  %v2327_v7 = vpop.xlane.xlu2 %2326 }
 0x774   : > { %3428 = vrcp.f32 %v2067_v6  ;;  %v2331_v43 = vsub.f32 %v2295_v11, %v2327_v7 }
 0x776   : > { %v3427_v38 = vpop.eup %3426  ;;  %v2333_v46 = vmul.f32 1.442695, %v2331_v43  ;;  %v2552_v43 = vld [vmem:[%s4312_s19 + $0x8] sm:$0xff] }
 0x777   : > { %v2197_v39 = vsel %vm1264_vm2, %v3427_v38, 0.0 }
 0x778   : > { %2198 = vadd.xlane.f32.xlu2 %v2197_v39 }
 0x77a   : > { %v3429_v40 = vpop.eup %3428 }
 0x77b   : > { %v2073_v41 = vmul.f32 %v3429_v40, %v3423_v13  ;;  %v2467_v45 = vpop.xlane.xlu0 %2466 }
 0x77c   : > { %v2471_v56 = vsub.f32 %v4547_v17, %v2467_v45 }
 0x77d   : > { %3189 = vmatmul.msk.f32.vlgmr.msra.gmra.mxu2 %vm1264_vm2, %v2073_v41 }
 0x77e   : > { %v2473_v61 = vmul.f32 1.442695, %v2471_v56 }
 0x7aa   : > { %v2190_v42 = vpop.xlane.xlu1 %2189 }
 0x7ab   : > { %v2192_v32 = vsub.f32 %v2183_v20, %v2190_v42  ;;  %v2554_v42 = vld [vmem:[%s4312_s19 + $0x18] sm:$0xff] }
 0x7ac   : > { %2577 = vmatpush.msrb.mxu3 %v2554_v42 }
 0x7ad   : > { %v2195_v44 = vmul.f32 1.442695, %v2192_v32  ;;  %v2553_v32 = vld [vmem:[%s4312_s19 + $0x10] sm:$0xff] }
 0x7ae   : > { %2578 = vmatpush.msrb.mxu3 %v2553_v32 }
 0x7af   : > { %3430 = vpow2.f32 %v2195_v44  ;;  %v2551_v44 = vld [vmem:[%s4312_s19] sm:$0xff] }
 0x7b0   : > { %3432 = vpow2.f32 %v2333_v46  ;;  %2579 = vmatpush.msrb.mxu3 %v2552_v43 }
 0x7b2   : > { %v2330_v47 = vpop.xlane.xlu2 %2329  ;;  %2580 = vmatpush.msrb.mxu3 %v2551_v44 }
 0x7b3   : > { %v2332_v49 = vsub.f32 %v2323_v26, %v2330_v47 }
 0x7b5   : > { %v3431_v48 = vpop.eup %3430  ;;  %v2335_v52 = vmul.f32 1.442695, %v2332_v49 }
 0x7b6   : > { %v2200_v12 = vsel %vm1264_vm2, %v3431_v48, 0.0  ;;  %v3433_v54 = vpop.eup %3432 }
 0x7b7   : > { %2201 = vadd.xlane.f32.xlu2 %v2200_v12  ;;  %v2070_v51 = vpop.xlane.xlu0 %2069  ;;  %v2337_v59 = vsel %vm1264_vm2, %v3433_v54, 0.0 }
 0x7b8   : > { %3434 = vrcp.f32 %v2070_v51 }
 0x7b9   : > { %3436 = vpow2.f32 %v2335_v52 }
 0x7ba   : > { %v2470_v53 = vpop.xlane.xlu1 %2469 }
 0x7bb   : > { %v2472_v55 = vsub.f32 %v2463_v10, %v2470_v53 }
 0x7bd   : > { %v2475_v57 = vmul.f32 1.442695, %v2472_v55 }
 0x7be   : > { %v3435_v58 = vpop.eup %3434 }
 0x7bf   : > { %v2074_v60 = vmul.f32 %v3435_v58, %v3425_v28  ;;  %3438 = vpow2.f32 %v2475_v57  ;;  %2338 = vadd.xlane.f32.xlu2 %v2337_v59  ;;  %v3437_v62 = vpop.eup %3436 }
 0x7c0   : > { %3440 = vpow2.f32 %v2473_v61  ;;  %v2340_v1 = vsel %vm1264_vm2, %v3437_v62, 0.0 }
 0x7c1   : > { %3190 = vmatmul.msk.f32.vlgmr.msrb.gmra.mxu0 %vm1264_vm2, %v2074_v60 }
 0x7c5   : > { %v3439_v63 = vpop.eup %3438 }
 0x7c6   : > { %v2480_v0 = vsel %vm1264_vm2, %v3439_v63, 0.0  ;;  %v3441_v3 = vpop.eup %3440 }
 0x7c7   : > { %2481 = vadd.xlane.f32.xlu1 %v2480_v0  ;;  %2341 = vadd.xlane.f32.xlu2 %v2340_v1  ;;  %v2477_v8 = vsel %vm1264_vm2, %v3441_v3, 0.0  ;;  %v2653_v0 = vld [vmem:[%s4317_s8 + $0x18] sm:$0xff]  ;;  %v2652_v1 = vld [vmem:[%s4317_s8 + $0x10] sm:$0xff] }
 0x7c8   : > { %2676 = vmatpush.msra.mxu1 %v2653_v0 }
 0x7ca   : > { %v3368_v2 = vpop.permute.xlu0 %3367  ;;  %2677 = vmatpush.msra.mxu1 %v2652_v1 }
 0x7cb   : > { %v3370_v4 = vunpack.i.h.bf16 %v3368_v2  ;;  %v3369_v5 = vunpack.i.l.bf16 %v3368_v2  ;;  %v2651_v2 = vld [vmem:[%s4317_s8 + $0x8] sm:$0xff] }
 0x7cc   : > { %2678 = vmatpush.msra.mxu1 %v2651_v2 }
 0x7cd   : > { %2228 = vmatpush.msrb.mxu2 %v3369_v5  ;;  %2254 = vmatpush.msra.mxu0 %v3370_v4 }
 0x7cf   : > { %2478 = vadd.xlane.f32.xlu2 %v2477_v8 }
 0x7d2   : > { %v2348_v11 = vpop.permute.xlu1 %2347  ;;  %v2488_v16 = vpop.permute.xlu0 %2487 }
 0x7d3   : > { %2368 = vmatpush.msra.mxu2 %v2348_v11 }
 0x7da   : > { %v2514_v33 = vpop.permute.xlu0 %2513 }
 0x7e7   : > { %2373 = vrot.lane.b32.xlu2 %v4510_v37, %s3850_s14  ;;  %s4789_s14 = scalar_lea.vmem %s4788_s21, %s4250_s1  ;;  %s3863_s1 = smov [#allocation17]  }
 0x7e8   : > { %v3377_v52 = vld [vmem:[%s4789_s14] ss:$0 sm:$0xff] }
 0x7eb   : > { %v2199_v13 = vpop.xlane.xlu2 %2198 }
 0x7ec   : > { %3442 = vrcp.f32 %v2199_v13 }
 0x7f2   : > { %v3443_v14 = vpop.eup %3442 }
 0x7f3   : > { %v2205_v15 = vmul.f32 %v3443_v14, %v3427_v38 }
 0x7f5   : > { %3195 = vmatmul.msk.f32.vlgmr.msrb.gmra.mxu2 %vm1264_vm2, %v2205_v15 }
 0x7f6   : > { %2508 = vmatpush.msrb.mxu2 %v2488_v16 }
 0x800   : > { %v2098_v17 = vpop.f32.mrf.mxu2 }
 0x801   : > { %2127 = vst.msk [vmem:[#allocation2] sm:$0xff] %vm1264_vm2, %v2098_v17 }
 0x82a   : > { %v2202_v18 = vpop.xlane.xlu2 %2201 }
 0x82b   : > { %3444 = vrcp.f32 %v2202_v18 }
 0x831   : > { %v3445_v19 = vpop.eup %3444 }
 0x832   : > { %v2206_v20 = vmul.f32 %v3445_v19, %v3431_v48  ;;  %v2339_v21 = vpop.xlane.xlu2 %2338 }
 0x833   : > { %3446 = vrcp.f32 %v2339_v21  ;;  %v2695_v21 = vld [vmem:[%s4306_s28 + $0x30] sm:$0xff] }
 0x834   : > { %3196 = vmatmul.msk.f32.vlgmr.msra.gmra.mxu0 %vm1264_vm2, %v2206_v20  ;;  %v2696_v20 = vld [vmem:[%s4306_s28 + $0x38] sm:$0xff] }
 0x839   : > { %v3447_v37 = vpop.eup %3446 }
 0x83a   : > { %v2345_v22 = vmul.f32 %v3447_v37, %v3433_v54  ;;  %v2342_v23 = vpop.xlane.xlu2 %2341  ;;  %v2482_v26 = vpop.xlane.xlu1 %2481 }
 0x83b   : > { %3448 = vrcp.f32 %v2342_v23 }
 0x83c   : > { %3201 = vmatmul.msk.f32.vlgmr.msra.gmra.mxu2 %vm1264_vm2, %v2345_v22 }
 0x83d   : > { %2716 = vmatpush.msra.mxu2 %v2696_v20 }
 0x83e   : > { %v2124_v24 = vpop.f32.mrf.mxu0 }
 0x83f   : > { %2128 = vst.msk [vmem:[#allocation2 + $0x8] sm:$0xff] %vm1264_vm2, %v2124_v24  ;;  %2717 = vmatpush.msra.mxu2 %v2695_v21 }
 0x841   : > { %v3449_v27 = vpop.eup %3448 }
 0x842   : > { %v2479_v25 = vpop.xlane.xlu2 %2478  ;;  %v2346_v29 = vmul.f32 %v3449_v27, %v3437_v62 }
 0x843   : > { %3450 = vrcp.f32 %v2479_v25  ;;  %v2694_v25 = vld [vmem:[%s4306_s28 + $0x28] sm:$0xff] }
 0x844   : > { %3452 = vrcp.f32 %v2482_v26  ;;  %2718 = vmatpush.msra.mxu2 %v2694_v25 }
 0x849   : > { %v3451_v28 = vpop.eup %3450 }
 0x84a   : > { %v2485_v31 = vmul.f32 %v3451_v28, %v3441_v3  ;;  %v2374_v10 = vpop.permute.xlu2 %2373  ;;  %v3453_v34 = vpop.eup %3452  ;;  %v2693_v28 = vld [vmem:[%s4306_s28 + $0x20] sm:$0xff] }
 0x84b   : > { %2394 = vmatpush.msrb.mxu0 %v2374_v10  ;;  %v2486_v35 = vmul.f32 %v3453_v34, %v3439_v63  ;;  %v2692_v10 = vld [vmem:[%s4306_s28 + $0x18] sm:$0xff]  ;;  %v3378_v34 = vld [vmem:[%s1189_s7] ss:$0 sm:$0xff]  ;;  %2719 = vmatpush.msra.mxu2 %v2693_v28 }
 0x84c   : > { %3202 = vmatmul.msk.f32.vlgmr.msrb.gmra.mxu0 %vm1264_vm2, %v2346_v29  ;;  %3207 = vmatmul.msk.f32.vlgmr.msrb.gmra.mxu2 %vm1264_vm2, %v2485_v31 }
 0x84d   : > { %2534 = vmatpush.msra.mxu0 %v2514_v33  ;;  %2720 = vmatpush.msra.mxu2 %v2692_v10 }
 0x854   : > { %3208 = vmatmul.msk.f32.vlgmr.msra.gmra.mxu0 %vm1264_vm2, %v2486_v35 }
 0x878   : > { %v2230_v36 = vpop.f32.mrf.mxu2 }
 0x879   : > { %2261 = vrot.lane.b32.xlu0 %v2230_v36, %s3859_s16 }
 0x8b1   : > { %v2256_v38 = vpop.f32.mrf.mxu0 }
 0x8bf   : > { %v2370_v6 = vpop.f32.mrf.mxu2 }
 0x8c0   : > { %2401 = vrot.lane.b32.xlu0 %v2370_v6, %s3860_s15  ;;  %v3379_v6 = vld [vmem:[%s1002_s0] ss:$0 sm:$0xff] }
 0x8c8   : > { %2263 = vrot.lane.b32.xlu0 %v2256_v38, %s3859_s16 }
 0x8c9   : > { %v2396_v39 = vpop.f32.mrf.mxu0 }
 0x8cf   : > { %v2510_v40 = vpop.f32.mrf.mxu2 }
 0x8d0   : > { %2541 = vrot.lane.b32.xlu2 %v2510_v40, %s3861_s10 }
 0x8d1   : > { %v2536_v41 = vpop.f32.mrf.mxu0 }
 0x8d2   : > { %2543 = vrot.lane.b32.xlu0 %v2536_v41, %s3861_s10 }
 0x8d8   : > { %2403 = vrot.lane.b32.xlu2 %v2396_v39, %s3860_s15 }
 0x8eb   : > { %v2262_v7 = vpop.permute.xlu0 %2261 }
 0x8ec   : > { %2267 = vst.msk [vmem:[#allocation2] sm:$0xff] %vm1532_vm3, %v2262_v7 }
 0x92a   : > { %v2542_v45 = vpop.permute.xlu2 %2541 }
 0x932   : > { %v2402_v46 = vpop.permute.xlu0 %2401  ;;  %v2404_v48 = vpop.permute.xlu2 %2403 }
 0x933   : > { %2407 = vst.msk [vmem:[#allocation2] sm:$0xff] %vm1673_vm4, %v2402_v46 }
 0x934   : > { %2547 = vst.msk [vmem:[#allocation2] sm:$0xff] %vm1814_vm5, %v2542_v45 }
 0x93a   : > { %v2264_v47 = vpop.permute.xlu0 %2263 }
 0x93b   : > { %2268 = vst.msk [vmem:[#allocation2 + $0x8] sm:$0xff] %vm1532_vm3, %v2264_v47  ;;  %v2549_v49 = vld [vmem:[#allocation2] sm:$0xff] }
 0x93c   : > { %2408 = vst.msk [vmem:[#allocation2 + $0x8] sm:$0xff] %vm1673_vm4, %v2404_v48  ;;  %3209 = vmatmul.msk.f32.vlgmr.msrb.gmra.mxu3 %vm1229_vm1, %v2549_v49  ;;  %v2691_v49 = vld [vmem:[%s4306_s28 + $0x10] sm:$0xff]  ;;  %vm2701_vm4 = vcmask 523264  }
 0x93d   : > { %2721 = vmatpush.msra.mxu2 %v2691_v49 }
 0x944   : > { %v2544_v12 = vpop.permute.xlu0 %2543 }
 0x945   : > { %2548 = vst.msk [vmem:[#allocation2 + $0x8] sm:$0xff] %vm1814_vm5, %v2544_v12  ;;  %v2690_v12 = vld [vmem:[%s4306_s28 + $0x8] sm:$0xff] }
 0x946   : > { %2722 = vmatpush.msra.mxu2 %v2690_v12 }
 0x94c   : > { %v2550_v51 = vld [vmem:[#allocation2 + $0x8] sm:$0xff] }
 0x94d   : > { %3210 = vmatmul.msk.f32.gmra.mxu3 %vm1229_vm1, %v2550_v51  ;;  %v2689_v51 = vld [vmem:[%s4306_s28] sm:$0xff] }
 0x94e   : > { %2723 = vmatpush.msra.mxu2 %v2689_v51 }
 0x9bf   : > { %v2582_v53 = vpop.f32.mrf.mxu3 }
 0x9c0   : > { %v2583_v54 = vadd.f32 %v3377_v52, %v2582_v53 }
 0x9c2   : > { %v2588_v55 = vadd.f32 %v2583_v54, %v4474_v9 }
 0x9c4   : > { %v2590_v56 = vsel %vm1229_vm1, %v2588_v55, 0.0  ;;  %v2598_v57 = vmul.f32 %v2588_v55, %v2588_v55 }
 0x9c5   : > { %2591 = vadd.xlane.f32.xlu2 %v2590_v56 }
 0x9c6   : > { %v2600_v58 = vsel %vm1229_vm1, %v2598_v57, 0.0 }
 0x9c7   : > { %2601 = vadd.xlane.f32.xlu1 %v2600_v58 }
 0x9d0   : > { %v2585_v59 = vpop.f32.mrf.mxu3 }
 0x9d1   : > { %v2586_v60 = vadd.f32 %v3377_v52, %v2585_v59  ;;  %v3380_v52 = vld [vmem:[%s1195_s23] ss:$0 sm:$0xff] }
 0x9d2   : > { %v3381_v59 = vld [vmem:[%s1203_s17] ss:$0 sm:$0xff] }
 0x9d3   : > { %v4609_v61 = vadd.f32 %v2586_v60, %v4482_v30  ;;  %v2650_v30 = vld [vmem:[%s4317_s8] sm:$0xff] }
 0x9d4   : > { %2679 = vmatpush.msra.mxu1 %v2650_v30 }
 0x9d5   : > { %v2593_v62 = vsel %vm1229_vm1, %v4609_v61, 0.0  ;;  %v2599_v9 = vmul.f32 %v4609_v61, %v4609_v61 }
 0x9d6   : > { %2594 = vadd.xlane.f32.xlu0 %v2593_v62 }
 0x9d7   : > { %v2603_v63 = vsel %vm1229_vm1, %v2599_v9, 0.0 }
 0x9d8   : > { %2604 = vadd.xlane.f32.xlu1 %v2603_v63 }
 0xa38   : > { %v2592_v3 = vpop.xlane.xlu2 %2591 }
 0xa39   : > { %v2596_v4 = vmul.f32 %v2592_v3, %v4462_v50 }
 0xa3a   : > { %v2602_v5 = vpop.xlane.xlu1 %2601 }
 0xa3b   : > { %v2608_v8 = vmul.f32 %v2596_v4, %v2596_v4  ;;  %v2606_v11 = vmul.f32 %v2602_v5, %v4462_v50  ;;  %v2612_v33 = vsub.f32 %v2588_v55, %v2596_v4 }
 0xa3d   : > { %v2610_v13 = vsub.f32 %v2606_v11, %v2608_v8 }
 0xa3f   : > { %v2614_v14 = vadd.f32 1e-05, %v2610_v13 }
 0xa41   : > { %3454 = vrsqrt.f32 %v2614_v14  ;;  %vm2622_vm14 = vweird.f32 %v2614_v14 }
 0xa47   : > { %v3455_v15 = vpop.eup %3454 }
 0xa48   : > { %v2617_v16 = vmul.f32 %v3455_v15, %v2614_v14  ;;  %vm2623_vm13 = vweird.f32 %v3455_v15 }
 0xa49   : > { %v2595_v17 = vpop.xlane.xlu0 %2594  ;;  %vm2624_vm15 = vmor %vm2622_vm14, %vm2623_vm13 }
 0xa4a   : > { %v2618_v18 = vmul.f32 %v3455_v15, %v2617_v16  ;;  %v2597_v19 = vmul.f32 %v2595_v17, %v4462_v50 }
 0xa4b   : > { %v2605_v37 = vpop.xlane.xlu1 %2604 }
 0xa4c   : > { %v2619_v22 = vmul.f32 0.5, %v2618_v18  ;;  %v2609_v23 = vmul.f32 %v2597_v19, %v2597_v19  ;;  %v2607_v24 = vmul.f32 %v2605_v37, %v4462_v50  ;;  %v2613_v44 = vsub.f32 %v4609_v61, %v2597_v19 }
 0xa4e   : > { %v2620_v26 = vsub.f32 1.5, %v2619_v22  ;;  %v2611_v27 = vsub.f32 %v2607_v24, %v2609_v23 }
 0xa50   : > { %v2621_v29 = vmul.f32 %v3455_v15, %v2620_v26  ;;  %v2615_v31 = vadd.f32 1e-05, %v2611_v27 }
 0xa52   : > { %v2625_v35 = vsel %vm2624_vm15, %v3455_v15, %v2621_v29  ;;  %3456 = vrsqrt.f32 %v2615_v31  ;;  %vm2632_vm2 = vweird.f32 %v2615_v31 }
 0xa53   : > { %v2636_v36 = vmul.f32 %v2625_v35, %v2612_v33 }
 0xa55   : > { %v2642_v38 = vmul.f32 %v3378_v34, %v2636_v36 }
 0xa57   : > { %v2648_v39 = vadd.f32 %v3379_v6, %v2642_v38 }
 0xa58   : > { %v3457_v40 = vpop.eup %3456 }
 0xa59   : > { %v2627_v41 = vmul.f32 %v3457_v40, %v2615_v31  ;;  %3211 = vmatmul.msk.f32.vlgmr.msra.gmra.mxu1 %vm1229_vm1, %v2648_v39  ;;  %vm2633_vm0 = vweird.f32 %v3457_v40 }
 0xa5a   : > { %vm2634_vm3 = vmor %vm2632_vm2, %vm2633_vm0 }
 0xa5b   : > { %v2628_v7 = vmul.f32 %v3457_v40, %v2627_v41 }
 0xa5d   : > { %v2629_v42 = vmul.f32 0.5, %v2628_v7 }
 0xa5f   : > { %v2630_v32 = vsub.f32 1.5, %v2629_v42 }
 0xa61   : > { %v2631_v43 = vmul.f32 %v3457_v40, %v2630_v32 }
 0xa63   : > { %v2635_v45 = vsel %vm2634_vm3, %v3457_v40, %v2631_v43 }
 0xa64   : > { %v2637_v46 = vmul.f32 %v2635_v45, %v2613_v44 }
 0xa66   : > { %v2643_v47 = vmul.f32 %v3378_v34, %v2637_v46 }
 0xa68   : > { %v2649_v48 = vadd.f32 %v3379_v6, %v2643_v47  ;;  %v3383_v6 = vld [vmem:[%s1011_s20] ss:$0 sm:$0xff]  ;;  %s2802_s20 = sshll.u32 %s4794_s11, 4  ;;  %s2803_s20 = int_to_ptr.hbm [resolvable:$true] %s2802_s20 }
 0xa6a   : > { %3212 = vmatmul.msk.f32.gmra.mxu1 %vm1229_vm1, %v2649_v48 }
 0xad6   : > { %v2681_v53 = vpop.f32.mrf.mxu1 }
 0xad7   : > { %v2682_v54 = vadd.f32 %v3380_v52, %v2681_v53 }
 0xad9   : > { %v2687_v55 = vmax.f32 %v2682_v54, 0.0 }
 0xadb   : > { %3213 = vmatmul.msk.f32.vlgmr.msra.gmra.mxu2 %vm2701_vm4, %v2687_v55 }
 0xae7   : > { %v2684_v56 = vpop.f32.mrf.mxu1 }
 0xae8   : > { %v2685_v57 = vadd.f32 %v3380_v52, %v2684_v56 }
 0xaea   : > { %v2688_v58 = vmax.f32 %v2685_v57, 0.0 }
 0xaec   : > { %3214 = vmatmul.msk.f32.gmra.mxu2 %vm2701_vm4, %v2688_v58 }
 0xb5e   : > { %v2725_v60 = vpop.f32.mrf.mxu2 }
 0xb5f   : > { %v2726_v61 = vadd.f32 %v3381_v59, %v2725_v60 }
 0xb61   : > { %v2731_v62 = vadd.f32 %v2726_v61, %v2648_v39 }
 0xb63   : > { %v2733_v9 = vsel %vm1229_vm1, %v2731_v62, 0.0  ;;  %v2741_v4 = vmul.f32 %v2731_v62, %v2731_v62 }
 0xb64   : > { %2734 = vadd.xlane.f32.xlu1 %v2733_v9 }
 0xb65   : > { %v2743_v5 = vsel %vm1229_vm1, %v2741_v4, 0.0 }
 0xb6f   : > { %v2728_v63 = vpop.f32.mrf.mxu2 }
 0xb70   : > { %v2729_v0 = vadd.f32 %v3381_v59, %v2728_v63 }
 0xb72   : > { %v2732_v1 = vadd.f32 %v2729_v0, %v2649_v48 }
 0xb74   : > { %v2736_v2 = vsel %vm1229_vm1, %v2732_v1, 0.0  ;;  %v2742_v3 = vmul.f32 %v2732_v1, %v2732_v1 }
 0xb75   : > { %2737 = vadd.xlane.f32.xlu1 %v2736_v2 }
 0xb76   : > { %v2746_v30 = vsel %vm1229_vm1, %v2742_v3, 0.0 }
 0xb77   : > { %2747 = vadd.xlane.f32.xlu2 %v2746_v30 }
 0xb7d   : > { %2744 = vadd.xlane.f32.xlu1 %v2743_v5 }
 0xbd7   : > { %v2735_v8 = vpop.xlane.xlu1 %2734 }
 0xbd8   : > { %v2739_v17 = vmul.f32 %v2735_v8, %v4462_v50 }
 0xbda   : > { %v2751_v21 = vmul.f32 %v2739_v17, %v2739_v17  ;;  %v2755_v7 = vsub.f32 %v2731_v62, %v2739_v17 }
 0xbe8   : > { %v2738_v11 = vpop.xlane.xlu1 %2737 }
 0xbe9   : > { %v2740_v13 = vmul.f32 %v2738_v11, %v4462_v50 }
 0xbea   : > { %v2748_v14 = vpop.xlane.xlu2 %2747 }
 0xbeb   : > { %v2752_v15 = vmul.f32 %v2740_v13, %v2740_v13  ;;  %v2750_v16 = vmul.f32 %v2748_v14, %v4462_v50  ;;  %v2756_v34 = vsub.f32 %v2732_v1, %v2740_v13 }
 0xbed   : > { %v2754_v18 = vsub.f32 %v2750_v16, %v2752_v15 }
 0xbef   : > { %v2758_v19 = vadd.f32 1e-05, %v2754_v18 }
 0xbf0   : > { %v2745_v20 = vpop.xlane.xlu1 %2744 }
 0xbf1   : > { %3458 = vrsqrt.f32 %v2758_v19  ;;  %v2749_v37 = vmul.f32 %v2745_v20, %v4462_v50  ;;  %vm2775_vm6 = vweird.f32 %v2758_v19  ;;  %v3382_v50 = vld [vmem:[%s1192_s3] ss:$0 sm:$0xff]  ;;  %s2800_s3 = sshll.u32 %s3863_s1, 4  ;;  %s2801_s3 = int_to_ptr.vmem [resolvable:$true] %s2800_s3 }
 0xbf3   : > { %v2753_v22 = vsub.f32 %v2749_v37, %v2751_v21 }
 0xbf5   : > { %v2757_v23 = vadd.f32 1e-05, %v2753_v22 }
 0xbf7   : > { %v3459_v24 = vpop.eup %3458  ;;  %3460 = vrsqrt.f32 %v2757_v23  ;;  %vm2765_vm9 = vweird.f32 %v2757_v23 }
 0xbf8   : > { %v2770_v25 = vmul.f32 %v3459_v24, %v2758_v19  ;;  %vm2776_vm5 = vweird.f32 %v3459_v24 }
 0xbf9   : > { %vm2777_vm7 = vmor %vm2775_vm6, %vm2776_vm5 }
 0xbfa   : > { %v2771_v26 = vmul.f32 %v3459_v24, %v2770_v25 }
 0xbfc   : > { %v2772_v27 = vmul.f32 0.5, %v2771_v26 }
 0xbfd   : > { %v3461_v28 = vpop.eup %3460 }
 0xbfe   : > { %v2773_v29 = vsub.f32 1.5, %v2772_v27  ;;  %v2760_v31 = vmul.f32 %v3461_v28, %v2757_v23  ;;  %vm2766_vm8 = vweird.f32 %v3461_v28 }
 0xbff   : > { %vm2767_vm10 = vmor %vm2765_vm9, %vm2766_vm8 }
 0xc00   : > { %v2774_v10 = vmul.f32 %v3459_v24, %v2773_v29  ;;  %v2761_v33 = vmul.f32 %v3461_v28, %v2760_v31 }
 0xc02   : > { %v2778_v35 = vsel %vm2777_vm7, %v3459_v24, %v2774_v10  ;;  %v2762_v36 = vmul.f32 0.5, %v2761_v33 }
 0xc03   : > { %v2780_v38 = vmul.f32 %v2778_v35, %v2756_v34 }
 0xc04   : > { %v2763_v39 = vsub.f32 1.5, %v2762_v36 }
 0xc05   : > { %v2786_v40 = vmul.f32 %v3382_v50, %v2780_v38 }
 0xc06   : > { %v2764_v41 = vmul.f32 %v3461_v28, %v2763_v39 }
 0xc07   : > { %v2792_v42 = vadd.f32 %v3383_v6, %v2786_v40 }
 0xc08   : > { %v2768_v32 = vsel %vm2767_vm10, %v3461_v28, %v2764_v41 }
 0xc09   : > { %2794 = vst.msk [vmem:[#allocation17 + $0x8] sm:$0xff] %vm1229_vm1, %v2792_v42  ;;  %v2779_v43 = vmul.f32 %v2768_v32, %v2755_v7 }
 0xc0b   : > { %v2785_v44 = vmul.f32 %v3382_v50, %v2779_v43 }
 0xc0d   : > { %v2791_v45 = vadd.f32 %v3383_v6, %v2785_v44 }
 0xc0f   : > { %2793 = vst.msk [vmem:[#allocation17] sm:$0xff] %vm1229_vm1, %v2791_v45 }
 0xc10   : > { %3255 = dma.vmem_to_hbm [thread:$0]  (%p3299_p5), %s2801_s3, 256, %s2803_s20, [#allocation5], %s3864_s22, %s3864_s22, %s3859_s16  }
 0xc11   : > { %3823 = dma.done.wait (%p3299_p5), [#allocation5], 256  }
 0xc12   : > { %3825 = vsyncadd (%p3299_p5), [#allocation5], 4294967040 }
 0xc13 PF: > { %s4795_s28 = sld [smem:[#allocation24_spill]]  ;;  %s4798_s5 = smov %s3832_s26 }
 0xc14   : > { %s4796_s13 = sld [smem:[#allocation23_spill]] }
 0xc15   : > { %s4797_s27 = sld [smem:[#allocation25_spill]] }
 0xc19   : > { %p35_p8 = scmp.ge.s32.totalorder %s4795_s28, 4  }
 0xc1a   : > { %s4799_s26 = smov %s4796_s13 }
 0xc1b   :  { %37 = sbr.rel (!%p35_p8) target bundleno = 31 (0x1f), region = 269 }
 0xc20   :  { %2819 = vsyncpa [#allocation4], 1 }
 0xc21   :  { %2821 = vsyncpa [#allocation4 + $0x1], 1 }
 0xc22   :  { %2822 = vsyncpa [#allocation7], 1 }
 0xc23   :  { %2823 = vsyncpa [#allocation10], 1 }
 0xc24   :  { %2824 = vsyncpa [#allocation5], 1 }
 0xc25   :  { %2826 = vsyncpa [#allocation5 + $0x1], 1 }

</bundles_post_ra>
